<compile_context>
chip_gen: v7x
topology: tpu7x:2x2x1
jax: 0.10.0
libtpu: 0.0.40
codegen_flags: <defaults>
</compile_context>

<pallas_src>
import jax
import jax.numpy as jnp
from jax import lax
from jax.experimental import pallas as pl
from jax.experimental.pallas import tpu as pltpu

# ---- config (stands in for loadJson()) ----
HIDDEN_SIZE = 32
NUM_CLASSES = 10
THRESHOLD = 1.0          # threshold_value
TAU = 2.0                # leak
RESET_RESIDUAL = False   # True => v_reset=None (soft reset); False => hard reset to 0
BIAS_OPTION = True

OUT_CHANNELS = 16
KERNEL_SIZE = 5
STRIDE = 2
PADDING = 2


def _lif_step(v, x):
    # spikingjelly LIFNode with decay_input=False:
    #   charge: v = v - (v - v_reset)/tau + x      (v_reset None -> treated as 0)
    #   fire:   spike = heaviside(v - v_threshold)   (tie: v >= thr fires)
    #   reset:  soft (v_reset None): v = v - spike * thr
    #           hard (v_reset = 0):  v = 0 where spiked
    # NOTE: RESET_RESIDUAL=True means soft reset (v_reset=None).  If the real
    # model uses decay_input=True, the charge line must become
    # v = v + (x - v)/tau instead.  TODO(synk): confirm against config.json.
    v = v * (1.0 - 1.0 / TAU) + x
    fired = v >= THRESHOLD
    s = jnp.where(fired, 1.0, 0.0)
    if RESET_RESIDUAL:
        v = v - s * THRESHOLD          # soft reset (keep residual above threshold)
    else:
        v = jnp.where(fired, 0.0, v)   # hard reset to 0
    return v, s


def snn_mlp_kernel(patches_ref, wc_ref, bc_ref, w1_ref, b1_ref, w2_ref, b2_ref,
                   out_ref, s1_ref, s2_ref, s3_ref):
    TB, _ = patches_ref.shape            # T*B rows of im2col patches (t-major)
    C = wc_ref.shape[1]
    H = w1_ref.shape[1]
    NC = w2_ref.shape[1]
    B = out_ref.shape[0]
    T = TB // B

    def lif_scan_inplace(ref, feat):
        # Pure-VPU recurrence over time; rows t*B..t*B+B-1 hold timestep t.
        # Reads pre-activation rows and overwrites them with spikes.
        def body(t, v):
            row = pl.multiple_of(t * B, B)
            x = ref[pl.ds(row, B), :]
            v, s = _lif_step(v, x)
            ref[pl.ds(row, B), :] = s
            return v
        lax.fori_loop(0, T, body, jnp.zeros((B, feat), jnp.float32), unroll=True)

    # --- Stage 0: Conv1d for ALL timesteps in one MXU pass -> (T*B, C) ---
    s1_ref[...] = (
        jnp.dot(patches_ref[...], wc_ref[...], preferred_element_type=jnp.float32)
        + bc_ref[...]
    )
    # --- Stage 1: cnn_IF_layer (LIF) scan, in place ---
    lif_scan_inplace(s1_ref, C)

    # --- Stage 2: hidden Linear for ALL timesteps in one MXU pass -> (T*B, H) ---
    s2_ref[...] = (
        jnp.dot(s1_ref[...], w1_ref[...], preferred_element_type=jnp.float32)
        + b1_ref[...]
    )
    # --- Stage 3: hidden LIF scan, in place ---
    lif_scan_inplace(s2_ref, H)

    # --- Stage 4: out Linear for ALL timesteps in one MXU pass -> (T*B, NC) ---
    s3_ref[...] = (
        jnp.dot(s2_ref[...], w2_ref[...], preferred_element_type=jnp.float32)
        + b2_ref[...]
    )

    # --- Stage 5: out LIF scan + time-average accumulation ---
    def body3(t, carry):
        v, acc = carry
        row = pl.multiple_of(t * B, B)
        v, s = _lif_step(v, s3_ref[pl.ds(row, B), :])
        return v, acc + s

    _, acc = lax.fori_loop(
        0, T, body3,
        (jnp.zeros((B, NC), jnp.float32), jnp.zeros((B, NC), jnp.float32)),
        unroll=True)
    out_ref[...] = acc * jnp.float32(1.0 / T)


def snn_mlp_forward(x, conv_w, conv_b, w1, b1, w2, b2):
    """x: (B, L) f32. conv_w: (C, 1, K). w1: (C, H). w2: (H, NC)."""
    B, L = x.shape
    C, _, K = conv_w.shape
    T = (L + 2 * PADDING - K) // STRIDE + 1

    # glue: im2col (zero padding) -> (T*B, K) row-major by timestep.
    # TODO(synk): this pad/gather/transpose/reshape runs as tiny XLA ops and
    # materializes `patches` in HBM; at larger shapes either build patches
    # in-kernel from x_pad or enable allow_input_fusion for operand 0.
    x_pad = jnp.pad(x, ((0, 0), (PADDING, PADDING)))
    idx = jnp.arange(T)[:, None] * STRIDE + jnp.arange(K)[None, :]       # (T, K)
    patches = jnp.transpose(x_pad[:, idx], (1, 0, 2)).reshape(T * B, K)  # (T*B, K)
    wc = jnp.transpose(conv_w[:, 0, :], (1, 0)).astype(jnp.float32)      # (K, C)
    bc = conv_b.reshape(1, C).astype(jnp.float32)
    b1r = b1.reshape(1, -1).astype(jnp.float32)
    b2r = b2.reshape(1, -1).astype(jnp.float32)

    # TODO(synk): when B scales up, add a real batch grid axis (B_TILE multiple
    # of 8) marked dimension_semantics=("parallel",) so v7x's 2 TensorCores
    # both get work, and size B_TILE against 64 MiB VMEM (raise
    # vmem_limit_bytes above the 16/32 MiB defaults on v5e/v6e).  At B=8
    # everything fits in one block (~30 KB of scratch).
    out = pl.pallas_call(
        snn_mlp_kernel,
        out_shape=jax.ShapeDtypeStruct((B, NUM_CLASSES), jnp.float32),
        grid=(1,),
        in_specs=[
            pl.BlockSpec(patches.shape, lambda i: (0, 0)),
            pl.BlockSpec(wc.shape, lambda i: (0, 0)),
            pl.BlockSpec(bc.shape, lambda i: (0, 0)),
            pl.BlockSpec(w1.shape, lambda i: (0, 0)),
            pl.BlockSpec(b1r.shape, lambda i: (0, 0)),
            pl.BlockSpec(w2.shape, lambda i: (0, 0)),
            pl.BlockSpec(b2r.shape, lambda i: (0, 0)),
        ],
        out_specs=pl.BlockSpec((B, NUM_CLASSES), lambda i: (0, 0)),
        scratch_shapes=[
            pltpu.VMEM((T * B, C), jnp.float32),            # conv -> S1 spikes
            pltpu.VMEM((T * B, HIDDEN_SIZE), jnp.float32),  # hidden pre-act -> S2
            pltpu.VMEM((T * B, NUM_CLASSES), jnp.float32),  # out pre-act
        ],
        compiler_params=pltpu.CompilerParams(
            dimension_semantics=("arbitrary",)),
    )(patches, wc, bc, w1.astype(jnp.float32), b1r, w2.astype(jnp.float32), b2r)
    return out


def snn_mlp_reference(x, conv_w, conv_b, w1, b1, w2, b2):
    """Pure-JAX mirror of the PyTorch forward (for verification)."""
    B, L = x.shape
    C, _, K = conv_w.shape
    T = (L + 2 * PADDING - K) // STRIDE + 1
    x_pad = jnp.pad(x, ((0, 0), (PADDING, PADDING)))
    idx = jnp.arange(T)[:, None] * STRIDE + jnp.arange(K)[None, :]
    patches = x_pad[:, idx]                                  # (B, T, K)
    conv = jnp.einsum('btk,ck->bct', patches, conv_w[:, 0, :]) + conv_b[None, :, None]

    v1 = jnp.zeros((B, C)); v2 = jnp.zeros((B, HIDDEN_SIZE)); v3 = jnp.zeros((B, NUM_CLASSES))
    acc = jnp.zeros((B, NUM_CLASSES))
    for t in range(T):
        v1, s1 = _lif_step(v1, conv[:, :, t])
        v2, s2 = _lif_step(v2, s1 @ w1 + b1[None, :])
        v3, s3 = _lif_step(v3, s2 @ w2 + b2[None, :])
        acc = acc + s3
    return acc / T


if __name__ == "__main__":
    B, L = 8, 32
    key = jax.random.PRNGKey(0)
    kx, kc, k1, k2, kbc, kb1, kb2 = jax.random.split(key, 7)

    x = jax.random.normal(kx, (B, L), jnp.float32)
    conv_w = jax.random.normal(kc, (OUT_CHANNELS, 1, KERNEL_SIZE), jnp.float32) * 0.5
    w1 = jax.random.normal(k1, (OUT_CHANNELS, HIDDEN_SIZE), jnp.float32) * 0.3
    w2 = jax.random.normal(k2, (HIDDEN_SIZE, NUM_CLASSES), jnp.float32) * 0.3
    if BIAS_OPTION:
        conv_b = jax.random.normal(kbc, (OUT_CHANNELS,), jnp.float32) * 0.1
        b1 = jax.random.normal(kb1, (HIDDEN_SIZE,), jnp.float32) * 0.1
        b2 = jax.random.normal(kb2, (NUM_CLASSES,), jnp.float32) * 0.1
    else:
        conv_b = jnp.zeros((OUT_CHANNELS,), jnp.float32)
        b1 = jnp.zeros((HIDDEN_SIZE,), jnp.float32)
        b2 = jnp.zeros((NUM_CLASSES,), jnp.float32)

    out = snn_mlp_forward(x, conv_w, conv_b, w1, b1, w2, b2)
    out = jax.block_until_ready(out)

    ref = snn_mlp_reference(x, conv_w, conv_b, w1, b1, w2, b2)
    assert out.shape == (B, NUM_CLASSES)
    assert jnp.allclose(out, ref, atol=1e-5, rtol=1e-5), (out, ref)
    print("KERNEL_OK")
</pallas_src>

<mosaic_0001>
module attributes {stable_mosaic.version = 11 : i64} {
  func.func @snn_mlp_kernel(%arg0: i32, %arg1: memref<128x5xf32, #tpu.memory_space<vmem>>, %arg2: memref<5x16xf32, #tpu.memory_space<vmem>>, %arg3: memref<1x16xf32, #tpu.memory_space<vmem>>, %arg4: memref<16x32xf32, #tpu.memory_space<vmem>>, %arg5: memref<1x32xf32, #tpu.memory_space<vmem>>, %arg6: memref<32x10xf32, #tpu.memory_space<vmem>>, %arg7: memref<1x10xf32, #tpu.memory_space<vmem>>, %arg8: memref<8x10xf32, #tpu.memory_space<vmem>>, %arg9: memref<128x16xf32, #tpu.memory_space<vmem>>, %arg10: memref<128x32xf32, #tpu.memory_space<vmem>>, %arg11: memref<128x10xf32, #tpu.memory_space<vmem>>) attributes {dimension_semantics = [#tpu.dimension_semantics<arbitrary>], iteration_bounds = array<i64: 1>, scalar_prefetch = 0 : i64, scratch_operands = 3 : i64, tpu.core_type = #tpu.core_type<tc>, window_params = [{pipeline_mode = #tpu.pipeline_mode<synchronous>, transform_indices = @transform_0, window_bounds = array<i64: 128, 5>}, {pipeline_mode = #tpu.pipeline_mode<synchronous>, transform_indices = @transform_1, window_bounds = array<i64: 5, 16>}, {pipeline_mode = #tpu.pipeline_mode<synchronous>, transform_indices = @transform_2, window_bounds = array<i64: 1, 16>}, {pipeline_mode = #tpu.pipeline_mode<synchronous>, transform_indices = @transform_3, window_bounds = array<i64: 16, 32>}, {pipeline_mode = #tpu.pipeline_mode<synchronous>, transform_indices = @transform_4, window_bounds = array<i64: 1, 32>}, {pipeline_mode = #tpu.pipeline_mode<synchronous>, transform_indices = @transform_5, window_bounds = array<i64: 32, 10>}, {pipeline_mode = #tpu.pipeline_mode<synchronous>, transform_indices = @transform_6, window_bounds = array<i64: 1, 10>}, {pipeline_mode = #tpu.pipeline_mode<synchronous>, transform_indices = @transform_7, window_bounds = array<i64: 8, 10>}]} {
    %c0 = arith.constant 0 : index
    %c0_0 = arith.constant 0 : index
    %0 = vector.load %arg1[%c0, %c0_0] : memref<128x5xf32, #tpu.memory_space<vmem>>, vector<128x5xf32>
    %c0_1 = arith.constant 0 : index
    %c0_2 = arith.constant 0 : index
    %1 = vector.load %arg2[%c0_1, %c0_2] : memref<5x16xf32, #tpu.memory_space<vmem>>, vector<5x16xf32>
    %cst = arith.constant dense<0.000000e+00> : vector<128x16xf32>
    %2 = tpu.matmul %0, %1, %cst {dimension_numbers = #tpu.dot_dimension_numbers<[1], [0], [0], [1], [0, 0, 1, 1], [], []>} : vector<128x5xf32>, vector<5x16xf32>, vector<128x16xf32> -> vector<128x16xf32>
    %c0_3 = arith.constant 0 : index
    %c0_4 = arith.constant 0 : index
    %3 = vector.load %arg3[%c0_3, %c0_4] : memref<1x16xf32, #tpu.memory_space<vmem>>, vector<1x16xf32>
    %4 = vector.broadcast %3 : vector<1x16xf32> to vector<128x16xf32>
    %5 = arith.addf %2, %4 : vector<128x16xf32>
    %c0_5 = arith.constant 0 : index
    %c0_6 = arith.constant 0 : index
    %6 = vector.load %arg9[%c0_5, %c0_6] : memref<128x16xf32, #tpu.memory_space<vmem>>, vector<128x16xf32>
    tpu.vector_store %arg9[%c0_5, %c0_6], %5 {strides = array<i32>} : memref<128x16xf32, #tpu.memory_space<vmem>>, vector<128x16xf32>,
    %cst_7 = arith.constant 0.000000e+00 : f32
    %7 = vector.broadcast %cst_7 : f32 to vector<8x16xf32>
    %c0_i32 = arith.constant 0 : i32
    %c8_i32 = arith.constant 8 : i32
    %8 = arith.muli %c0_i32, %c8_i32 : i32
    %9 = tpu.assume_multiple %8, 8 : i32
    %10 = arith.index_cast %9 : i32 to index
    %c0_8 = arith.constant 0 : index
    %11 = vector.load %arg9[%10, %c0_8] : memref<128x16xf32, #tpu.memory_space<vmem>>, vector<8x16xf32>
    %cst_9 = arith.constant 5.000000e-01 : f32
    %12 = vector.broadcast %cst_9 : f32 to vector<8x16xf32>
    %13 = arith.mulf %7, %12 : vector<8x16xf32>
    %14 = arith.addf %13, %11 : vector<8x16xf32>
    %cst_10 = arith.constant 1.000000e+00 : f32
    %15 = vector.broadcast %cst_10 : f32 to vector<8x16xf32>
    %16 = arith.cmpf oge, %14, %15 : vector<8x16xf32>
    %cst_11 = arith.constant 1.000000e+00 : f32
    %cst_12 = arith.constant 0.000000e+00 : f32
    %17 = vector.broadcast %cst_11 : f32 to vector<8x16xf32>
    %18 = vector.broadcast %cst_12 : f32 to vector<8x16xf32>
    %19 = arith.select %16, %17, %18 : vector<8x16xi1>, vector<8x16xf32>
    %cst_13 = arith.constant 0.000000e+00 : f32
    %20 = vector.broadcast %cst_13 : f32 to vector<8x16xf32>
    %21 = arith.select %16, %20, %14 : vector<8x16xi1>, vector<8x16xf32>
    %22 = arith.index_cast %9 : i32 to index
    %c0_14 = arith.constant 0 : index
    %23 = vector.load %arg9[%22, %c0_14] : memref<128x16xf32, #tpu.memory_space<vmem>>, vector<8x16xf32>
    tpu.vector_store %arg9[%22, %c0_14], %19 {strides = array<i32>} : memref<128x16xf32, #tpu.memory_space<vmem>>, vector<8x16xf32>,
    %c1_i32 = arith.constant 1 : i32
    %c8_i32_15 = arith.constant 8 : i32
    %24 = arith.muli %c1_i32, %c8_i32_15 : i32
    %25 = tpu.assume_multiple %24, 8 : i32
    %26 = arith.index_cast %25 : i32 to index
    %c0_16 = arith.constant 0 : index
    %27 = vector.load %arg9[%26, %c0_16] : memref<128x16xf32, #tpu.memory_space<vmem>>, vector<8x16xf32>
    %cst_17 = arith.constant 5.000000e-01 : f32
    %28 = vector.broadcast %cst_17 : f32 to vector<8x16xf32>
    %29 = arith.mulf %21, %28 : vector<8x16xf32>
    %30 = arith.addf %29, %27 : vector<8x16xf32>
    %cst_18 = arith.constant 1.000000e+00 : f32
    %31 = vector.broadcast %cst_18 : f32 to vector<8x16xf32>
    %32 = arith.cmpf oge, %30, %31 : vector<8x16xf32>
    %cst_19 = arith.constant 1.000000e+00 : f32
    %cst_20 = arith.constant 0.000000e+00 : f32
    %33 = vector.broadcast %cst_19 : f32 to vector<8x16xf32>
    %34 = vector.broadcast %cst_20 : f32 to vector<8x16xf32>
    %35 = arith.select %32, %33, %34 : vector<8x16xi1>, vector<8x16xf32>
    %cst_21 = arith.constant 0.000000e+00 : f32
    %36 = vector.broadcast %cst_21 : f32 to vector<8x16xf32>
    %37 = arith.select %32, %36, %30 : vector<8x16xi1>, vector<8x16xf32>
    %38 = arith.index_cast %25 : i32 to index
    %c0_22 = arith.constant 0 : index
    %39 = vector.load %arg9[%38, %c0_22] : memref<128x16xf32, #tpu.memory_space<vmem>>, vector<8x16xf32>
    tpu.vector_store %arg9[%38, %c0_22], %35 {strides = array<i32>} : memref<128x16xf32, #tpu.memory_space<vmem>>, vector<8x16xf32>,
    %c2_i32 = arith.constant 2 : i32
    %c8_i32_23 = arith.constant 8 : i32
    %40 = arith.muli %c2_i32, %c8_i32_23 : i32
    %41 = tpu.assume_multiple %40, 8 : i32
    %42 = arith.index_cast %41 : i32 to index
    %c0_24 = arith.constant 0 : index
    %43 = vector.load %arg9[%42, %c0_24] : memref<128x16xf32, #tpu.memory_space<vmem>>, vector<8x16xf32>
    %cst_25 = arith.constant 5.000000e-01 : f32
    %44 = vector.broadcast %cst_25 : f32 to vector<8x16xf32>
    %45 = arith.mulf %37, %44 : vector<8x16xf32>
    %46 = arith.addf %45, %43 : vector<8x16xf32>
    %cst_26 = arith.constant 1.000000e+00 : f32
    %47 = vector.broadcast %cst_26 : f32 to vector<8x16xf32>
    %48 = arith.cmpf oge, %46, %47 : vector<8x16xf32>
    %cst_27 = arith.constant 1.000000e+00 : f32
    %cst_28 = arith.constant 0.000000e+00 : f32
    %49 = vector.broadcast %cst_27 : f32 to vector<8x16xf32>
    %50 = vector.broadcast %cst_28 : f32 to vector<8x16xf32>
    %51 = arith.select %48, %49, %50 : vector<8x16xi1>, vector<8x16xf32>
    %cst_29 = arith.constant 0.000000e+00 : f32
    %52 = vector.broadcast %cst_29 : f32 to vector<8x16xf32>
    %53 = arith.select %48, %52, %46 : vector<8x16xi1>, vector<8x16xf32>
    %54 = arith.index_cast %41 : i32 to index
    %c0_30 = arith.constant 0 : index
    %55 = vector.load %arg9[%54, %c0_30] : memref<128x16xf32, #tpu.memory_space<vmem>>, vector<8x16xf32>
    tpu.vector_store %arg9[%54, %c0_30], %51 {strides = array<i32>} : memref<128x16xf32, #tpu.memory_space<vmem>>, vector<8x16xf32>,
    %c3_i32 = arith.constant 3 : i32
    %c8_i32_31 = arith.constant 8 : i32
    %56 = arith.muli %c3_i32, %c8_i32_31 : i32
    %57 = tpu.assume_multiple %56, 8 : i32
    %58 = arith.index_cast %57 : i32 to index
    %c0_32 = arith.constant 0 : index
    %59 = vector.load %arg9[%58, %c0_32] : memref<128x16xf32, #tpu.memory_space<vmem>>, vector<8x16xf32>
    %cst_33 = arith.constant 5.000000e-01 : f32
    %60 = vector.broadcast %cst_33 : f32 to vector<8x16xf32>
    %61 = arith.mulf %53, %60 : vector<8x16xf32>
    %62 = arith.addf %61, %59 : vector<8x16xf32>
    %cst_34 = arith.constant 1.000000e+00 : f32
    %63 = vector.broadcast %cst_34 : f32 to vector<8x16xf32>
    %64 = arith.cmpf oge, %62, %63 : vector<8x16xf32>
    %cst_35 = arith.constant 1.000000e+00 : f32
    %cst_36 = arith.constant 0.000000e+00 : f32
    %65 = vector.broadcast %cst_35 : f32 to vector<8x16xf32>
    %66 = vector.broadcast %cst_36 : f32 to vector<8x16xf32>
    %67 = arith.select %64, %65, %66 : vector<8x16xi1>, vector<8x16xf32>
    %cst_37 = arith.constant 0.000000e+00 : f32
    %68 = vector.broadcast %cst_37 : f32 to vector<8x16xf32>
    %69 = arith.select %64, %68, %62 : vector<8x16xi1>, vector<8x16xf32>
    %70 = arith.index_cast %57 : i32 to index
    %c0_38 = arith.constant 0 : index
    %71 = vector.load %arg9[%70, %c0_38] : memref<128x16xf32, #tpu.memory_space<vmem>>, vector<8x16xf32>
    tpu.vector_store %arg9[%70, %c0_38], %67 {strides = array<i32>} : memref<128x16xf32, #tpu.memory_space<vmem>>, vector<8x16xf32>,
    %c4_i32 = arith.constant 4 : i32
    %c8_i32_39 = arith.constant 8 : i32
    %72 = arith.muli %c4_i32, %c8_i32_39 : i32
    %73 = tpu.assume_multiple %72, 8 : i32
    %74 = arith.index_cast %73 : i32 to index
    %c0_40 = arith.constant 0 : index
    %75 = vector.load %arg9[%74, %c0_40] : memref<128x16xf32, #tpu.memory_space<vmem>>, vector<8x16xf32>
    %cst_41 = arith.constant 5.000000e-01 : f32
    %76 = vector.broadcast %cst_41 : f32 to vector<8x16xf32>
    %77 = arith.mulf %69, %76 : vector<8x16xf32>
    %78 = arith.addf %77, %75 : vector<8x16xf32>
    %cst_42 = arith.constant 1.000000e+00 : f32
    %79 = vector.broadcast %cst_42 : f32 to vector<8x16xf32>
    %80 = arith.cmpf oge, %78, %79 : vector<8x16xf32>
    %cst_43 = arith.constant 1.000000e+00 : f32
    %cst_44 = arith.constant 0.000000e+00 : f32
    %81 = vector.broadcast %cst_43 : f32 to vector<8x16xf32>
    %82 = vector.broadcast %cst_44 : f32 to vector<8x16xf32>
    %83 = arith.select %80, %81, %82 : vector<8x16xi1>, vector<8x16xf32>
    %cst_45 = arith.constant 0.000000e+00 : f32
    %84 = vector.broadcast %cst_45 : f32 to vector<8x16xf32>
    %85 = arith.select %80, %84, %78 : vector<8x16xi1>, vector<8x16xf32>
    %86 = arith.index_cast %73 : i32 to index
    %c0_46 = arith.constant 0 : index
    %87 = vector.load %arg9[%86, %c0_46] : memref<128x16xf32, #tpu.memory_space<vmem>>, vector<8x16xf32>
    tpu.vector_store %arg9[%86, %c0_46], %83 {strides = array<i32>} : memref<128x16xf32, #tpu.memory_space<vmem>>, vector<8x16xf32>,
    %c5_i32 = arith.constant 5 : i32
    %c8_i32_47 = arith.constant 8 : i32
    %88 = arith.muli %c5_i32, %c8_i32_47 : i32
    %89 = tpu.assume_multiple %88, 8 : i32
    %90 = arith.index_cast %89 : i32 to index
    %c0_48 = arith.constant 0 : index
    %91 = vector.load %arg9[%90, %c0_48] : memref<128x16xf32, #tpu.memory_space<vmem>>, vector<8x16xf32>
    %cst_49 = arith.constant 5.000000e-01 : f32
    %92 = vector.broadcast %cst_49 : f32 to vector<8x16xf32>
    %93 = arith.mulf %85, %92 : vector<8x16xf32>
    %94 = arith.addf %93, %91 : vector<8x16xf32>
    %cst_50 = arith.constant 1.000000e+00 : f32
    %95 = vector.broadcast %cst_50 : f32 to vector<8x16xf32>
    %96 = arith.cmpf oge, %94, %95 : vector<8x16xf32>
    %cst_51 = arith.constant 1.000000e+00 : f32
    %cst_52 = arith.constant 0.000000e+00 : f32
    %97 = vector.broadcast %cst_51 : f32 to vector<8x16xf32>
    %98 = vector.broadcast %cst_52 : f32 to vector<8x16xf32>
    %99 = arith.select %96, %97, %98 : vector<8x16xi1>, vector<8x16xf32>
    %cst_53 = arith.constant 0.000000e+00 : f32
    %100 = vector.broadcast %cst_53 : f32 to vector<8x16xf32>
    %101 = arith.select %96, %100, %94 : vector<8x16xi1>, vector<8x16xf32>
    %102 = arith.index_cast %89 : i32 to index
    %c0_54 = arith.constant 0 : index
    %103 = vector.load %arg9[%102, %c0_54] : memref<128x16xf32, #tpu.memory_space<vmem>>, vector<8x16xf32>
    tpu.vector_store %arg9[%102, %c0_54], %99 {strides = array<i32>} : memref<128x16xf32, #tpu.memory_space<vmem>>, vector<8x16xf32>,
    %c6_i32 = arith.constant 6 : i32
    %c8_i32_55 = arith.constant 8 : i32
    %104 = arith.muli %c6_i32, %c8_i32_55 : i32
    %105 = tpu.assume_multiple %104, 8 : i32
    %106 = arith.index_cast %105 : i32 to index
    %c0_56 = arith.constant 0 : index
    %107 = vector.load %arg9[%106, %c0_56] : memref<128x16xf32, #tpu.memory_space<vmem>>, vector<8x16xf32>
    %cst_57 = arith.constant 5.000000e-01 : f32
    %108 = vector.broadcast %cst_57 : f32 to vector<8x16xf32>
    %109 = arith.mulf %101, %108 : vector<8x16xf32>
    %110 = arith.addf %109, %107 : vector<8x16xf32>
    %cst_58 = arith.constant 1.000000e+00 : f32
    %111 = vector.broadcast %cst_58 : f32 to vector<8x16xf32>
    %112 = arith.cmpf oge, %110, %111 : vector<8x16xf32>
    %cst_59 = arith.constant 1.000000e+00 : f32
    %cst_60 = arith.constant 0.000000e+00 : f32
    %113 = vector.broadcast %cst_59 : f32 to vector<8x16xf32>
    %114 = vector.broadcast %cst_60 : f32 to vector<8x16xf32>
    %115 = arith.select %112, %113, %114 : vector<8x16xi1>, vector<8x16xf32>
    %cst_61 = arith.constant 0.000000e+00 : f32
    %116 = vector.broadcast %cst_61 : f32 to vector<8x16xf32>
    %117 = arith.select %112, %116, %110 : vector<8x16xi1>, vector<8x16xf32>
    %118 = arith.index_cast %105 : i32 to index
    %c0_62 = arith.constant 0 : index
    %119 = vector.load %arg9[%118, %c0_62] : memref<128x16xf32, #tpu.memory_space<vmem>>, vector<8x16xf32>
    tpu.vector_store %arg9[%118, %c0_62], %115 {strides = array<i32>} : memref<128x16xf32, #tpu.memory_space<vmem>>, vector<8x16xf32>,
    %c7_i32 = arith.constant 7 : i32
    %c8_i32_63 = arith.constant 8 : i32
    %120 = arith.muli %c7_i32, %c8_i32_63 : i32
    %121 = tpu.assume_multiple %120, 8 : i32
    %122 = arith.index_cast %121 : i32 to index
    %c0_64 = arith.constant 0 : index
    %123 = vector.load %arg9[%122, %c0_64] : memref<128x16xf32, #tpu.memory_space<vmem>>, vector<8x16xf32>
    %cst_65 = arith.constant 5.000000e-01 : f32
    %124 = vector.broadcast %cst_65 : f32 to vector<8x16xf32>
    %125 = arith.mulf %117, %124 : vector<8x16xf32>
    %126 = arith.addf %125, %123 : vector<8x16xf32>
    %cst_66 = arith.constant 1.000000e+00 : f32
    %127 = vector.broadcast %cst_66 : f32 to vector<8x16xf32>
    %128 = arith.cmpf oge, %126, %127 : vector<8x16xf32>
    %cst_67 = arith.constant 1.000000e+00 : f32
    %cst_68 = arith.constant 0.000000e+00 : f32
    %129 = vector.broadcast %cst_67 : f32 to vector<8x16xf32>
    %130 = vector.broadcast %cst_68 : f32 to vector<8x16xf32>
    %131 = arith.select %128, %129, %130 : vector<8x16xi1>, vector<8x16xf32>
    %cst_69 = arith.constant 0.000000e+00 : f32
    %132 = vector.broadcast %cst_69 : f32 to vector<8x16xf32>
    %133 = arith.select %128, %132, %126 : vector<8x16xi1>, vector<8x16xf32>
    %134 = arith.index_cast %121 : i32 to index
    %c0_70 = arith.constant 0 : index
    %135 = vector.load %arg9[%134, %c0_70] : memref<128x16xf32, #tpu.memory_space<vmem>>, vector<8x16xf32>
    tpu.vector_store %arg9[%134, %c0_70], %131 {strides = array<i32>} : memref<128x16xf32, #tpu.memory_space<vmem>>, vector<8x16xf32>,
    %c8_i32_71 = arith.constant 8 : i32
    %c8_i32_72 = arith.constant 8 : i32
    %136 = arith.muli %c8_i32_71, %c8_i32_72 : i32
    %137 = tpu.assume_multiple %136, 8 : i32
    %138 = arith.index_cast %137 : i32 to index
    %c0_73 = arith.constant 0 : index
    %139 = vector.load %arg9[%138, %c0_73] : memref<128x16xf32, #tpu.memory_space<vmem>>, vector<8x16xf32>
    %cst_74 = arith.constant 5.000000e-01 : f32
    %140 = vector.broadcast %cst_74 : f32 to vector<8x16xf32>
    %141 = arith.mulf %133, %140 : vector<8x16xf32>
    %142 = arith.addf %141, %139 : vector<8x16xf32>
    %cst_75 = arith.constant 1.000000e+00 : f32
    %143 = vector.broadcast %cst_75 : f32 to vector<8x16xf32>
    %144 = arith.cmpf oge, %142, %143 : vector<8x16xf32>
    %cst_76 = arith.constant 1.000000e+00 : f32
    %cst_77 = arith.constant 0.000000e+00 : f32
    %145 = vector.broadcast %cst_76 : f32 to vector<8x16xf32>
    %146 = vector.broadcast %cst_77 : f32 to vector<8x16xf32>
    %147 = arith.select %144, %145, %146 : vector<8x16xi1>, vector<8x16xf32>
    %cst_78 = arith.constant 0.000000e+00 : f32
    %148 = vector.broadcast %cst_78 : f32 to vector<8x16xf32>
    %149 = arith.select %144, %148, %142 : vector<8x16xi1>, vector<8x16xf32>
    %150 = arith.index_cast %137 : i32 to index
    %c0_79 = arith.constant 0 : index
    %151 = vector.load %arg9[%150, %c0_79] : memref<128x16xf32, #tpu.memory_space<vmem>>, vector<8x16xf32>
    tpu.vector_store %arg9[%150, %c0_79], %147 {strides = array<i32>} : memref<128x16xf32, #tpu.memory_space<vmem>>, vector<8x16xf32>,
    %c9_i32 = arith.constant 9 : i32
    %c8_i32_80 = arith.constant 8 : i32
    %152 = arith.muli %c9_i32, %c8_i32_80 : i32
    %153 = tpu.assume_multiple %152, 8 : i32
    %154 = arith.index_cast %153 : i32 to index
    %c0_81 = arith.constant 0 : index
    %155 = vector.load %arg9[%154, %c0_81] : memref<128x16xf32, #tpu.memory_space<vmem>>, vector<8x16xf32>
    %cst_82 = arith.constant 5.000000e-01 : f32
    %156 = vector.broadcast %cst_82 : f32 to vector<8x16xf32>
    %157 = arith.mulf %149, %156 : vector<8x16xf32>
    %158 = arith.addf %157, %155 : vector<8x16xf32>
    %cst_83 = arith.constant 1.000000e+00 : f32
    %159 = vector.broadcast %cst_83 : f32 to vector<8x16xf32>
    %160 = arith.cmpf oge, %158, %159 : vector<8x16xf32>
    %cst_84 = arith.constant 1.000000e+00 : f32
    %cst_85 = arith.constant 0.000000e+00 : f32
    %161 = vector.broadcast %cst_84 : f32 to vector<8x16xf32>
    %162 = vector.broadcast %cst_85 : f32 to vector<8x16xf32>
    %163 = arith.select %160, %161, %162 : vector<8x16xi1>, vector<8x16xf32>
    %cst_86 = arith.constant 0.000000e+00 : f32
    %164 = vector.broadcast %cst_86 : f32 to vector<8x16xf32>
    %165 = arith.select %160, %164, %158 : vector<8x16xi1>, vector<8x16xf32>
    %166 = arith.index_cast %153 : i32 to index
    %c0_87 = arith.constant 0 : index
    %167 = vector.load %arg9[%166, %c0_87] : memref<128x16xf32, #tpu.memory_space<vmem>>, vector<8x16xf32>
    tpu.vector_store %arg9[%166, %c0_87], %163 {strides = array<i32>} : memref<128x16xf32, #tpu.memory_space<vmem>>, vector<8x16xf32>,
    %c10_i32 = arith.constant 10 : i32
    %c8_i32_88 = arith.constant 8 : i32
    %168 = arith.muli %c10_i32, %c8_i32_88 : i32
    %169 = tpu.assume_multiple %168, 8 : i32
    %170 = arith.index_cast %169 : i32 to index
    %c0_89 = arith.constant 0 : index
    %171 = vector.load %arg9[%170, %c0_89] : memref<128x16xf32, #tpu.memory_space<vmem>>, vector<8x16xf32>
    %cst_90 = arith.constant 5.000000e-01 : f32
    %172 = vector.broadcast %cst_90 : f32 to vector<8x16xf32>
    %173 = arith.mulf %165, %172 : vector<8x16xf32>
    %174 = arith.addf %173, %171 : vector<8x16xf32>
    %cst_91 = arith.constant 1.000000e+00 : f32
    %175 = vector.broadcast %cst_91 : f32 to vector<8x16xf32>
    %176 = arith.cmpf oge, %174, %175 : vector<8x16xf32>
    %cst_92 = arith.constant 1.000000e+00 : f32
    %cst_93 = arith.constant 0.000000e+00 : f32
    %177 = vector.broadcast %cst_92 : f32 to vector<8x16xf32>
    %178 = vector.broadcast %cst_93 : f32 to vector<8x16xf32>
    %179 = arith.select %176, %177, %178 : vector<8x16xi1>, vector<8x16xf32>
    %cst_94 = arith.constant 0.000000e+00 : f32
    %180 = vector.broadcast %cst_94 : f32 to vector<8x16xf32>
    %181 = arith.select %176, %180, %174 : vector<8x16xi1>, vector<8x16xf32>
    %182 = arith.index_cast %169 : i32 to index
    %c0_95 = arith.constant 0 : index
    %183 = vector.load %arg9[%182, %c0_95] : memref<128x16xf32, #tpu.memory_space<vmem>>, vector<8x16xf32>
    tpu.vector_store %arg9[%182, %c0_95], %179 {strides = array<i32>} : memref<128x16xf32, #tpu.memory_space<vmem>>, vector<8x16xf32>,
    %c11_i32 = arith.constant 11 : i32
    %c8_i32_96 = arith.constant 8 : i32
    %184 = arith.muli %c11_i32, %c8_i32_96 : i32
    %185 = tpu.assume_multiple %184, 8 : i32
    %186 = arith.index_cast %185 : i32 to index
    %c0_97 = arith.constant 0 : index
    %187 = vector.load %arg9[%186, %c0_97] : memref<128x16xf32, #tpu.memory_space<vmem>>, vector<8x16xf32>
    %cst_98 = arith.constant 5.000000e-01 : f32
    %188 = vector.broadcast %cst_98 : f32 to vector<8x16xf32>
    %189 = arith.mulf %181, %188 : vector<8x16xf32>
    %190 = arith.addf %189, %187 : vector<8x16xf32>
    %cst_99 = arith.constant 1.000000e+00 : f32
    %191 = vector.broadcast %cst_99 : f32 to vector<8x16xf32>
    %192 = arith.cmpf oge, %190, %191 : vector<8x16xf32>
    %cst_100 = arith.constant 1.000000e+00 : f32
    %cst_101 = arith.constant 0.000000e+00 : f32
    %193 = vector.broadcast %cst_100 : f32 to vector<8x16xf32>
    %194 = vector.broadcast %cst_101 : f32 to vector<8x16xf32>
    %195 = arith.select %192, %193, %194 : vector<8x16xi1>, vector<8x16xf32>
    %cst_102 = arith.constant 0.000000e+00 : f32
    %196 = vector.broadcast %cst_102 : f32 to vector<8x16xf32>
    %197 = arith.select %192, %196, %190 : vector<8x16xi1>, vector<8x16xf32>
    %198 = arith.index_cast %185 : i32 to index
    %c0_103 = arith.constant 0 : index
    %199 = vector.load %arg9[%198, %c0_103] : memref<128x16xf32, #tpu.memory_space<vmem>>, vector<8x16xf32>
    tpu.vector_store %arg9[%198, %c0_103], %195 {strides = array<i32>} : memref<128x16xf32, #tpu.memory_space<vmem>>, vector<8x16xf32>,
    %c12_i32 = arith.constant 12 : i32
    %c8_i32_104 = arith.constant 8 : i32
    %200 = arith.muli %c12_i32, %c8_i32_104 : i32
    %201 = tpu.assume_multiple %200, 8 : i32
    %202 = arith.index_cast %201 : i32 to index
    %c0_105 = arith.constant 0 : index
    %203 = vector.load %arg9[%202, %c0_105] : memref<128x16xf32, #tpu.memory_space<vmem>>, vector<8x16xf32>
    %cst_106 = arith.constant 5.000000e-01 : f32
    %204 = vector.broadcast %cst_106 : f32 to vector<8x16xf32>
    %205 = arith.mulf %197, %204 : vector<8x16xf32>
    %206 = arith.addf %205, %203 : vector<8x16xf32>
    %cst_107 = arith.constant 1.000000e+00 : f32
    %207 = vector.broadcast %cst_107 : f32 to vector<8x16xf32>
    %208 = arith.cmpf oge, %206, %207 : vector<8x16xf32>
    %cst_108 = arith.constant 1.000000e+00 : f32
    %cst_109 = arith.constant 0.000000e+00 : f32
    %209 = vector.broadcast %cst_108 : f32 to vector<8x16xf32>
    %210 = vector.broadcast %cst_109 : f32 to vector<8x16xf32>
    %211 = arith.select %208, %209, %210 : vector<8x16xi1>, vector<8x16xf32>
    %cst_110 = arith.constant 0.000000e+00 : f32
    %212 = vector.broadcast %cst_110 : f32 to vector<8x16xf32>
    %213 = arith.select %208, %212, %206 : vector<8x16xi1>, vector<8x16xf32>
    %214 = arith.index_cast %201 : i32 to index
    %c0_111 = arith.constant 0 : index
    %215 = vector.load %arg9[%214, %c0_111] : memref<128x16xf32, #tpu.memory_space<vmem>>, vector<8x16xf32>
    tpu.vector_store %arg9[%214, %c0_111], %211 {strides = array<i32>} : memref<128x16xf32, #tpu.memory_space<vmem>>, vector<8x16xf32>,
    %c13_i32 = arith.constant 13 : i32
    %c8_i32_112 = arith.constant 8 : i32
    %216 = arith.muli %c13_i32, %c8_i32_112 : i32
    %217 = tpu.assume_multiple %216, 8 : i32
    %218 = arith.index_cast %217 : i32 to index
    %c0_113 = arith.constant 0 : index
    %219 = vector.load %arg9[%218, %c0_113] : memref<128x16xf32, #tpu.memory_space<vmem>>, vector<8x16xf32>
    %cst_114 = arith.constant 5.000000e-01 : f32
    %220 = vector.broadcast %cst_114 : f32 to vector<8x16xf32>
    %221 = arith.mulf %213, %220 : vector<8x16xf32>
    %222 = arith.addf %221, %219 : vector<8x16xf32>
    %cst_115 = arith.constant 1.000000e+00 : f32
    %223 = vector.broadcast %cst_115 : f32 to vector<8x16xf32>
    %224 = arith.cmpf oge, %222, %223 : vector<8x16xf32>
    %cst_116 = arith.constant 1.000000e+00 : f32
    %cst_117 = arith.constant 0.000000e+00 : f32
    %225 = vector.broadcast %cst_116 : f32 to vector<8x16xf32>
    %226 = vector.broadcast %cst_117 : f32 to vector<8x16xf32>
    %227 = arith.select %224, %225, %226 : vector<8x16xi1>, vector<8x16xf32>
    %cst_118 = arith.constant 0.000000e+00 : f32
    %228 = vector.broadcast %cst_118 : f32 to vector<8x16xf32>
    %229 = arith.select %224, %228, %222 : vector<8x16xi1>, vector<8x16xf32>
    %230 = arith.index_cast %217 : i32 to index
    %c0_119 = arith.constant 0 : index
    %231 = vector.load %arg9[%230, %c0_119] : memref<128x16xf32, #tpu.memory_space<vmem>>, vector<8x16xf32>
    tpu.vector_store %arg9[%230, %c0_119], %227 {strides = array<i32>} : memref<128x16xf32, #tpu.memory_space<vmem>>, vector<8x16xf32>,
    %c14_i32 = arith.constant 14 : i32
    %c8_i32_120 = arith.constant 8 : i32
    %232 = arith.muli %c14_i32, %c8_i32_120 : i32
    %233 = tpu.assume_multiple %232, 8 : i32
    %234 = arith.index_cast %233 : i32 to index
    %c0_121 = arith.constant 0 : index
    %235 = vector.load %arg9[%234, %c0_121] : memref<128x16xf32, #tpu.memory_space<vmem>>, vector<8x16xf32>
    %cst_122 = arith.constant 5.000000e-01 : f32
    %236 = vector.broadcast %cst_122 : f32 to vector<8x16xf32>
    %237 = arith.mulf %229, %236 : vector<8x16xf32>
    %238 = arith.addf %237, %235 : vector<8x16xf32>
    %cst_123 = arith.constant 1.000000e+00 : f32
    %239 = vector.broadcast %cst_123 : f32 to vector<8x16xf32>
    %240 = arith.cmpf oge, %238, %239 : vector<8x16xf32>
    %cst_124 = arith.constant 1.000000e+00 : f32
    %cst_125 = arith.constant 0.000000e+00 : f32
    %241 = vector.broadcast %cst_124 : f32 to vector<8x16xf32>
    %242 = vector.broadcast %cst_125 : f32 to vector<8x16xf32>
    %243 = arith.select %240, %241, %242 : vector<8x16xi1>, vector<8x16xf32>
    %cst_126 = arith.constant 0.000000e+00 : f32
    %244 = vector.broadcast %cst_126 : f32 to vector<8x16xf32>
    %245 = arith.select %240, %244, %238 : vector<8x16xi1>, vector<8x16xf32>
    %246 = arith.index_cast %233 : i32 to index
    %c0_127 = arith.constant 0 : index
    %247 = vector.load %arg9[%246, %c0_127] : memref<128x16xf32, #tpu.memory_space<vmem>>, vector<8x16xf32>
    tpu.vector_store %arg9[%246, %c0_127], %243 {strides = array<i32>} : memref<128x16xf32, #tpu.memory_space<vmem>>, vector<8x16xf32>,
    %c15_i32 = arith.constant 15 : i32
    %c8_i32_128 = arith.constant 8 : i32
    %248 = arith.muli %c15_i32, %c8_i32_128 : i32
    %249 = tpu.assume_multiple %248, 8 : i32
    %250 = arith.index_cast %249 : i32 to index
    %c0_129 = arith.constant 0 : index
    %251 = vector.load %arg9[%250, %c0_129] : memref<128x16xf32, #tpu.memory_space<vmem>>, vector<8x16xf32>
    %cst_130 = arith.constant 5.000000e-01 : f32
    %252 = vector.broadcast %cst_130 : f32 to vector<8x16xf32>
    %253 = arith.mulf %245, %252 : vector<8x16xf32>
    %254 = arith.addf %253, %251 : vector<8x16xf32>
    %cst_131 = arith.constant 1.000000e+00 : f32
    %255 = vector.broadcast %cst_131 : f32 to vector<8x16xf32>
    %256 = arith.cmpf oge, %254, %255 : vector<8x16xf32>
    %cst_132 = arith.constant 1.000000e+00 : f32
    %cst_133 = arith.constant 0.000000e+00 : f32
    %257 = vector.broadcast %cst_132 : f32 to vector<8x16xf32>
    %258 = vector.broadcast %cst_133 : f32 to vector<8x16xf32>
    %259 = arith.select %256, %257, %258 : vector<8x16xi1>, vector<8x16xf32>
    %cst_134 = arith.constant 0.000000e+00 : f32
    %260 = vector.broadcast %cst_134 : f32 to vector<8x16xf32>
    %261 = arith.select %256, %260, %254 : vector<8x16xi1>, vector<8x16xf32>
    %262 = arith.index_cast %249 : i32 to index
    %c0_135 = arith.constant 0 : index
    %263 = vector.load %arg9[%262, %c0_135] : memref<128x16xf32, #tpu.memory_space<vmem>>, vector<8x16xf32>
    tpu.vector_store %arg9[%262, %c0_135], %259 {strides = array<i32>} : memref<128x16xf32, #tpu.memory_space<vmem>>, vector<8x16xf32>,
    %c16_i32 = arith.constant 16 : i32
    %c0_136 = arith.constant 0 : index
    %c0_137 = arith.constant 0 : index
    %264 = vector.load %arg9[%c0_136, %c0_137] : memref<128x16xf32, #tpu.memory_space<vmem>>, vector<128x16xf32>
    %c0_138 = arith.constant 0 : index
    %c0_139 = arith.constant 0 : index
    %265 = vector.load %arg4[%c0_138, %c0_139] : memref<16x32xf32, #tpu.memory_space<vmem>>, vector<16x32xf32>
    %cst_140 = arith.constant dense<0.000000e+00> : vector<128x32xf32>
    %266 = tpu.matmul %264, %265, %cst_140 {dimension_numbers = #tpu.dot_dimension_numbers<[1], [0], [0], [1], [0, 0, 1, 1], [], []>} : vector<128x16xf32>, vector<16x32xf32>, vector<128x32xf32> -> vector<128x32xf32>
    %c0_141 = arith.constant 0 : index
    %c0_142 = arith.constant 0 : index
    %267 = vector.load %arg5[%c0_141, %c0_142] : memref<1x32xf32, #tpu.memory_space<vmem>>, vector<1x32xf32>
    %268 = vector.broadcast %267 : vector<1x32xf32> to vector<128x32xf32>
    %269 = arith.addf %266, %268 : vector<128x32xf32>
    %c0_143 = arith.constant 0 : index
    %c0_144 = arith.constant 0 : index
    %270 = vector.load %arg10[%c0_143, %c0_144] : memref<128x32xf32, #tpu.memory_space<vmem>>, vector<128x32xf32>
    tpu.vector_store %arg10[%c0_143, %c0_144], %269 {strides = array<i32>} : memref<128x32xf32, #tpu.memory_space<vmem>>, vector<128x32xf32>,
    %cst_145 = arith.constant 0.000000e+00 : f32
    %271 = vector.broadcast %cst_145 : f32 to vector<8x32xf32>
    %c0_i32_146 = arith.constant 0 : i32
    %c8_i32_147 = arith.constant 8 : i32
    %272 = arith.muli %c0_i32_146, %c8_i32_147 : i32
    %273 = tpu.assume_multiple %272, 8 : i32
    %274 = arith.index_cast %273 : i32 to index
    %c0_148 = arith.constant 0 : index
    %275 = vector.load %arg10[%274, %c0_148] : memref<128x32xf32, #tpu.memory_space<vmem>>, vector<8x32xf32>
    %cst_149 = arith.constant 5.000000e-01 : f32
    %276 = vector.broadcast %cst_149 : f32 to vector<8x32xf32>
    %277 = arith.mulf %271, %276 : vector<8x32xf32>
    %278 = arith.addf %277, %275 : vector<8x32xf32>
    %cst_150 = arith.constant 1.000000e+00 : f32
    %279 = vector.broadcast %cst_150 : f32 to vector<8x32xf32>
    %280 = arith.cmpf oge, %278, %279 : vector<8x32xf32>
    %cst_151 = arith.constant 1.000000e+00 : f32
    %cst_152 = arith.constant 0.000000e+00 : f32
    %281 = vector.broadcast %cst_151 : f32 to vector<8x32xf32>
    %282 = vector.broadcast %cst_152 : f32 to vector<8x32xf32>
    %283 = arith.select %280, %281, %282 : vector<8x32xi1>, vector<8x32xf32>
    %cst_153 = arith.constant 0.000000e+00 : f32
    %284 = vector.broadcast %cst_153 : f32 to vector<8x32xf32>
    %285 = arith.select %280, %284, %278 : vector<8x32xi1>, vector<8x32xf32>
    %286 = arith.index_cast %273 : i32 to index
    %c0_154 = arith.constant 0 : index
    %287 = vector.load %arg10[%286, %c0_154] : memref<128x32xf32, #tpu.memory_space<vmem>>, vector<8x32xf32>
    tpu.vector_store %arg10[%286, %c0_154], %283 {strides = array<i32>} : memref<128x32xf32, #tpu.memory_space<vmem>>, vector<8x32xf32>,
    %c1_i32_155 = arith.constant 1 : i32
    %c8_i32_156 = arith.constant 8 : i32
    %288 = arith.muli %c1_i32_155, %c8_i32_156 : i32
    %289 = tpu.assume_multiple %288, 8 : i32
    %290 = arith.index_cast %289 : i32 to index
    %c0_157 = arith.constant 0 : index
    %291 = vector.load %arg10[%290, %c0_157] : memref<128x32xf32, #tpu.memory_space<vmem>>, vector<8x32xf32>
    %cst_158 = arith.constant 5.000000e-01 : f32
    %292 = vector.broadcast %cst_158 : f32 to vector<8x32xf32>
    %293 = arith.mulf %285, %292 : vector<8x32xf32>
    %294 = arith.addf %293, %291 : vector<8x32xf32>
    %cst_159 = arith.constant 1.000000e+00 : f32
    %295 = vector.broadcast %cst_159 : f32 to vector<8x32xf32>
    %296 = arith.cmpf oge, %294, %295 : vector<8x32xf32>
    %cst_160 = arith.constant 1.000000e+00 : f32
    %cst_161 = arith.constant 0.000000e+00 : f32
    %297 = vector.broadcast %cst_160 : f32 to vector<8x32xf32>
    %298 = vector.broadcast %cst_161 : f32 to vector<8x32xf32>
    %299 = arith.select %296, %297, %298 : vector<8x32xi1>, vector<8x32xf32>
    %cst_162 = arith.constant 0.000000e+00 : f32
    %300 = vector.broadcast %cst_162 : f32 to vector<8x32xf32>
    %301 = arith.select %296, %300, %294 : vector<8x32xi1>, vector<8x32xf32>
    %302 = arith.index_cast %289 : i32 to index
    %c0_163 = arith.constant 0 : index
    %303 = vector.load %arg10[%302, %c0_163] : memref<128x32xf32, #tpu.memory_space<vmem>>, vector<8x32xf32>
    tpu.vector_store %arg10[%302, %c0_163], %299 {strides = array<i32>} : memref<128x32xf32, #tpu.memory_space<vmem>>, vector<8x32xf32>,
    %c2_i32_164 = arith.constant 2 : i32
    %c8_i32_165 = arith.constant 8 : i32
    %304 = arith.muli %c2_i32_164, %c8_i32_165 : i32
    %305 = tpu.assume_multiple %304, 8 : i32
    %306 = arith.index_cast %305 : i32 to index
    %c0_166 = arith.constant 0 : index
    %307 = vector.load %arg10[%306, %c0_166] : memref<128x32xf32, #tpu.memory_space<vmem>>, vector<8x32xf32>
    %cst_167 = arith.constant 5.000000e-01 : f32
    %308 = vector.broadcast %cst_167 : f32 to vector<8x32xf32>
    %309 = arith.mulf %301, %308 : vector<8x32xf32>
    %310 = arith.addf %309, %307 : vector<8x32xf32>
    %cst_168 = arith.constant 1.000000e+00 : f32
    %311 = vector.broadcast %cst_168 : f32 to vector<8x32xf32>
    %312 = arith.cmpf oge, %310, %311 : vector<8x32xf32>
    %cst_169 = arith.constant 1.000000e+00 : f32
    %cst_170 = arith.constant 0.000000e+00 : f32
    %313 = vector.broadcast %cst_169 : f32 to vector<8x32xf32>
    %314 = vector.broadcast %cst_170 : f32 to vector<8x32xf32>
    %315 = arith.select %312, %313, %314 : vector<8x32xi1>, vector<8x32xf32>
    %cst_171 = arith.constant 0.000000e+00 : f32
    %316 = vector.broadcast %cst_171 : f32 to vector<8x32xf32>
    %317 = arith.select %312, %316, %310 : vector<8x32xi1>, vector<8x32xf32>
    %318 = arith.index_cast %305 : i32 to index
    %c0_172 = arith.constant 0 : index
    %319 = vector.load %arg10[%318, %c0_172] : memref<128x32xf32, #tpu.memory_space<vmem>>, vector<8x32xf32>
    tpu.vector_store %arg10[%318, %c0_172], %315 {strides = array<i32>} : memref<128x32xf32, #tpu.memory_space<vmem>>, vector<8x32xf32>,
    %c3_i32_173 = arith.constant 3 : i32
    %c8_i32_174 = arith.constant 8 : i32
    %320 = arith.muli %c3_i32_173, %c8_i32_174 : i32
    %321 = tpu.assume_multiple %320, 8 : i32
    %322 = arith.index_cast %321 : i32 to index
    %c0_175 = arith.constant 0 : index
    %323 = vector.load %arg10[%322, %c0_175] : memref<128x32xf32, #tpu.memory_space<vmem>>, vector<8x32xf32>
    %cst_176 = arith.constant 5.000000e-01 : f32
    %324 = vector.broadcast %cst_176 : f32 to vector<8x32xf32>
    %325 = arith.mulf %317, %324 : vector<8x32xf32>
    %326 = arith.addf %325, %323 : vector<8x32xf32>
    %cst_177 = arith.constant 1.000000e+00 : f32
    %327 = vector.broadcast %cst_177 : f32 to vector<8x32xf32>
    %328 = arith.cmpf oge, %326, %327 : vector<8x32xf32>
    %cst_178 = arith.constant 1.000000e+00 : f32
    %cst_179 = arith.constant 0.000000e+00 : f32
    %329 = vector.broadcast %cst_178 : f32 to vector<8x32xf32>
    %330 = vector.broadcast %cst_179 : f32 to vector<8x32xf32>
    %331 = arith.select %328, %329, %330 : vector<8x32xi1>, vector<8x32xf32>
    %cst_180 = arith.constant 0.000000e+00 : f32
    %332 = vector.broadcast %cst_180 : f32 to vector<8x32xf32>
    %333 = arith.select %328, %332, %326 : vector<8x32xi1>, vector<8x32xf32>
    %334 = arith.index_cast %321 : i32 to index
    %c0_181 = arith.constant 0 : index
    %335 = vector.load %arg10[%334, %c0_181] : memref<128x32xf32, #tpu.memory_space<vmem>>, vector<8x32xf32>
    tpu.vector_store %arg10[%334, %c0_181], %331 {strides = array<i32>} : memref<128x32xf32, #tpu.memory_space<vmem>>, vector<8x32xf32>,
    %c4_i32_182 = arith.constant 4 : i32
    %c8_i32_183 = arith.constant 8 : i32
    %336 = arith.muli %c4_i32_182, %c8_i32_183 : i32
    %337 = tpu.assume_multiple %336, 8 : i32
    %338 = arith.index_cast %337 : i32 to index
    %c0_184 = arith.constant 0 : index
    %339 = vector.load %arg10[%338, %c0_184] : memref<128x32xf32, #tpu.memory_space<vmem>>, vector<8x32xf32>
    %cst_185 = arith.constant 5.000000e-01 : f32
    %340 = vector.broadcast %cst_185 : f32 to vector<8x32xf32>
    %341 = arith.mulf %333, %340 : vector<8x32xf32>
    %342 = arith.addf %341, %339 : vector<8x32xf32>
    %cst_186 = arith.constant 1.000000e+00 : f32
    %343 = vector.broadcast %cst_186 : f32 to vector<8x32xf32>
    %344 = arith.cmpf oge, %342, %343 : vector<8x32xf32>
    %cst_187 = arith.constant 1.000000e+00 : f32
    %cst_188 = arith.constant 0.000000e+00 : f32
    %345 = vector.broadcast %cst_187 : f32 to vector<8x32xf32>
    %346 = vector.broadcast %cst_188 : f32 to vector<8x32xf32>
    %347 = arith.select %344, %345, %346 : vector<8x32xi1>, vector<8x32xf32>
    %cst_189 = arith.constant 0.000000e+00 : f32
    %348 = vector.broadcast %cst_189 : f32 to vector<8x32xf32>
    %349 = arith.select %344, %348, %342 : vector<8x32xi1>, vector<8x32xf32>
    %350 = arith.index_cast %337 : i32 to index
    %c0_190 = arith.constant 0 : index
    %351 = vector.load %arg10[%350, %c0_190] : memref<128x32xf32, #tpu.memory_space<vmem>>, vector<8x32xf32>
    tpu.vector_store %arg10[%350, %c0_190], %347 {strides = array<i32>} : memref<128x32xf32, #tpu.memory_space<vmem>>, vector<8x32xf32>,
    %c5_i32_191 = arith.constant 5 : i32
    %c8_i32_192 = arith.constant 8 : i32
    %352 = arith.muli %c5_i32_191, %c8_i32_192 : i32
    %353 = tpu.assume_multiple %352, 8 : i32
    %354 = arith.index_cast %353 : i32 to index
    %c0_193 = arith.constant 0 : index
    %355 = vector.load %arg10[%354, %c0_193] : memref<128x32xf32, #tpu.memory_space<vmem>>, vector<8x32xf32>
    %cst_194 = arith.constant 5.000000e-01 : f32
    %356 = vector.broadcast %cst_194 : f32 to vector<8x32xf32>
    %357 = arith.mulf %349, %356 : vector<8x32xf32>
    %358 = arith.addf %357, %355 : vector<8x32xf32>
    %cst_195 = arith.constant 1.000000e+00 : f32
    %359 = vector.broadcast %cst_195 : f32 to vector<8x32xf32>
    %360 = arith.cmpf oge, %358, %359 : vector<8x32xf32>
    %cst_196 = arith.constant 1.000000e+00 : f32
    %cst_197 = arith.constant 0.000000e+00 : f32
    %361 = vector.broadcast %cst_196 : f32 to vector<8x32xf32>
    %362 = vector.broadcast %cst_197 : f32 to vector<8x32xf32>
    %363 = arith.select %360, %361, %362 : vector<8x32xi1>, vector<8x32xf32>
    %cst_198 = arith.constant 0.000000e+00 : f32
    %364 = vector.broadcast %cst_198 : f32 to vector<8x32xf32>
    %365 = arith.select %360, %364, %358 : vector<8x32xi1>, vector<8x32xf32>
    %366 = arith.index_cast %353 : i32 to index
    %c0_199 = arith.constant 0 : index
    %367 = vector.load %arg10[%366, %c0_199] : memref<128x32xf32, #tpu.memory_space<vmem>>, vector<8x32xf32>
    tpu.vector_store %arg10[%366, %c0_199], %363 {strides = array<i32>} : memref<128x32xf32, #tpu.memory_space<vmem>>, vector<8x32xf32>,
    %c6_i32_200 = arith.constant 6 : i32
    %c8_i32_201 = arith.constant 8 : i32
    %368 = arith.muli %c6_i32_200, %c8_i32_201 : i32
    %369 = tpu.assume_multiple %368, 8 : i32
    %370 = arith.index_cast %369 : i32 to index
    %c0_202 = arith.constant 0 : index
    %371 = vector.load %arg10[%370, %c0_202] : memref<128x32xf32, #tpu.memory_space<vmem>>, vector<8x32xf32>
    %cst_203 = arith.constant 5.000000e-01 : f32
    %372 = vector.broadcast %cst_203 : f32 to vector<8x32xf32>
    %373 = arith.mulf %365, %372 : vector<8x32xf32>
    %374 = arith.addf %373, %371 : vector<8x32xf32>
    %cst_204 = arith.constant 1.000000e+00 : f32
    %375 = vector.broadcast %cst_204 : f32 to vector<8x32xf32>
    %376 = arith.cmpf oge, %374, %375 : vector<8x32xf32>
    %cst_205 = arith.constant 1.000000e+00 : f32
    %cst_206 = arith.constant 0.000000e+00 : f32
    %377 = vector.broadcast %cst_205 : f32 to vector<8x32xf32>
    %378 = vector.broadcast %cst_206 : f32 to vector<8x32xf32>
    %379 = arith.select %376, %377, %378 : vector<8x32xi1>, vector<8x32xf32>
    %cst_207 = arith.constant 0.000000e+00 : f32
    %380 = vector.broadcast %cst_207 : f32 to vector<8x32xf32>
    %381 = arith.select %376, %380, %374 : vector<8x32xi1>, vector<8x32xf32>
    %382 = arith.index_cast %369 : i32 to index
    %c0_208 = arith.constant 0 : index
    %383 = vector.load %arg10[%382, %c0_208] : memref<128x32xf32, #tpu.memory_space<vmem>>, vector<8x32xf32>
    tpu.vector_store %arg10[%382, %c0_208], %379 {strides = array<i32>} : memref<128x32xf32, #tpu.memory_space<vmem>>, vector<8x32xf32>,
    %c7_i32_209 = arith.constant 7 : i32
    %c8_i32_210 = arith.constant 8 : i32
    %384 = arith.muli %c7_i32_209, %c8_i32_210 : i32
    %385 = tpu.assume_multiple %384, 8 : i32
    %386 = arith.index_cast %385 : i32 to index
    %c0_211 = arith.constant 0 : index
    %387 = vector.load %arg10[%386, %c0_211] : memref<128x32xf32, #tpu.memory_space<vmem>>, vector<8x32xf32>
    %cst_212 = arith.constant 5.000000e-01 : f32
    %388 = vector.broadcast %cst_212 : f32 to vector<8x32xf32>
    %389 = arith.mulf %381, %388 : vector<8x32xf32>
    %390 = arith.addf %389, %387 : vector<8x32xf32>
    %cst_213 = arith.constant 1.000000e+00 : f32
    %391 = vector.broadcast %cst_213 : f32 to vector<8x32xf32>
    %392 = arith.cmpf oge, %390, %391 : vector<8x32xf32>
    %cst_214 = arith.constant 1.000000e+00 : f32
    %cst_215 = arith.constant 0.000000e+00 : f32
    %393 = vector.broadcast %cst_214 : f32 to vector<8x32xf32>
    %394 = vector.broadcast %cst_215 : f32 to vector<8x32xf32>
    %395 = arith.select %392, %393, %394 : vector<8x32xi1>, vector<8x32xf32>
    %cst_216 = arith.constant 0.000000e+00 : f32
    %396 = vector.broadcast %cst_216 : f32 to vector<8x32xf32>
    %397 = arith.select %392, %396, %390 : vector<8x32xi1>, vector<8x32xf32>
    %398 = arith.index_cast %385 : i32 to index
    %c0_217 = arith.constant 0 : index
    %399 = vector.load %arg10[%398, %c0_217] : memref<128x32xf32, #tpu.memory_space<vmem>>, vector<8x32xf32>
    tpu.vector_store %arg10[%398, %c0_217], %395 {strides = array<i32>} : memref<128x32xf32, #tpu.memory_space<vmem>>, vector<8x32xf32>,
    %c8_i32_218 = arith.constant 8 : i32
    %c8_i32_219 = arith.constant 8 : i32
    %400 = arith.muli %c8_i32_218, %c8_i32_219 : i32
    %401 = tpu.assume_multiple %400, 8 : i32
    %402 = arith.index_cast %401 : i32 to index
    %c0_220 = arith.constant 0 : index
    %403 = vector.load %arg10[%402, %c0_220] : memref<128x32xf32, #tpu.memory_space<vmem>>, vector<8x32xf32>
    %cst_221 = arith.constant 5.000000e-01 : f32
    %404 = vector.broadcast %cst_221 : f32 to vector<8x32xf32>
    %405 = arith.mulf %397, %404 : vector<8x32xf32>
    %406 = arith.addf %405, %403 : vector<8x32xf32>
    %cst_222 = arith.constant 1.000000e+00 : f32
    %407 = vector.broadcast %cst_222 : f32 to vector<8x32xf32>
    %408 = arith.cmpf oge, %406, %407 : vector<8x32xf32>
    %cst_223 = arith.constant 1.000000e+00 : f32
    %cst_224 = arith.constant 0.000000e+00 : f32
    %409 = vector.broadcast %cst_223 : f32 to vector<8x32xf32>
    %410 = vector.broadcast %cst_224 : f32 to vector<8x32xf32>
    %411 = arith.select %408, %409, %410 : vector<8x32xi1>, vector<8x32xf32>
    %cst_225 = arith.constant 0.000000e+00 : f32
    %412 = vector.broadcast %cst_225 : f32 to vector<8x32xf32>
    %413 = arith.select %408, %412, %406 : vector<8x32xi1>, vector<8x32xf32>
    %414 = arith.index_cast %401 : i32 to index
    %c0_226 = arith.constant 0 : index
    %415 = vector.load %arg10[%414, %c0_226] : memref<128x32xf32, #tpu.memory_space<vmem>>, vector<8x32xf32>
    tpu.vector_store %arg10[%414, %c0_226], %411 {strides = array<i32>} : memref<128x32xf32, #tpu.memory_space<vmem>>, vector<8x32xf32>,
    %c9_i32_227 = arith.constant 9 : i32
    %c8_i32_228 = arith.constant 8 : i32
    %416 = arith.muli %c9_i32_227, %c8_i32_228 : i32
    %417 = tpu.assume_multiple %416, 8 : i32
    %418 = arith.index_cast %417 : i32 to index
    %c0_229 = arith.constant 0 : index
    %419 = vector.load %arg10[%418, %c0_229] : memref<128x32xf32, #tpu.memory_space<vmem>>, vector<8x32xf32>
    %cst_230 = arith.constant 5.000000e-01 : f32
    %420 = vector.broadcast %cst_230 : f32 to vector<8x32xf32>
    %421 = arith.mulf %413, %420 : vector<8x32xf32>
    %422 = arith.addf %421, %419 : vector<8x32xf32>
    %cst_231 = arith.constant 1.000000e+00 : f32
    %423 = vector.broadcast %cst_231 : f32 to vector<8x32xf32>
    %424 = arith.cmpf oge, %422, %423 : vector<8x32xf32>
    %cst_232 = arith.constant 1.000000e+00 : f32
    %cst_233 = arith.constant 0.000000e+00 : f32
    %425 = vector.broadcast %cst_232 : f32 to vector<8x32xf32>
    %426 = vector.broadcast %cst_233 : f32 to vector<8x32xf32>
    %427 = arith.select %424, %425, %426 : vector<8x32xi1>, vector<8x32xf32>
    %cst_234 = arith.constant 0.000000e+00 : f32
    %428 = vector.broadcast %cst_234 : f32 to vector<8x32xf32>
    %429 = arith.select %424, %428, %422 : vector<8x32xi1>, vector<8x32xf32>
    %430 = arith.index_cast %417 : i32 to index
    %c0_235 = arith.constant 0 : index
    %431 = vector.load %arg10[%430, %c0_235] : memref<128x32xf32, #tpu.memory_space<vmem>>, vector<8x32xf32>
    tpu.vector_store %arg10[%430, %c0_235], %427 {strides = array<i32>} : memref<128x32xf32, #tpu.memory_space<vmem>>, vector<8x32xf32>,
    %c10_i32_236 = arith.constant 10 : i32
    %c8_i32_237 = arith.constant 8 : i32
    %432 = arith.muli %c10_i32_236, %c8_i32_237 : i32
    %433 = tpu.assume_multiple %432, 8 : i32
    %434 = arith.index_cast %433 : i32 to index
    %c0_238 = arith.constant 0 : index
    %435 = vector.load %arg10[%434, %c0_238] : memref<128x32xf32, #tpu.memory_space<vmem>>, vector<8x32xf32>
    %cst_239 = arith.constant 5.000000e-01 : f32
    %436 = vector.broadcast %cst_239 : f32 to vector<8x32xf32>
    %437 = arith.mulf %429, %436 : vector<8x32xf32>
    %438 = arith.addf %437, %435 : vector<8x32xf32>
    %cst_240 = arith.constant 1.000000e+00 : f32
    %439 = vector.broadcast %cst_240 : f32 to vector<8x32xf32>
    %440 = arith.cmpf oge, %438, %439 : vector<8x32xf32>
    %cst_241 = arith.constant 1.000000e+00 : f32
    %cst_242 = arith.constant 0.000000e+00 : f32
    %441 = vector.broadcast %cst_241 : f32 to vector<8x32xf32>
    %442 = vector.broadcast %cst_242 : f32 to vector<8x32xf32>
    %443 = arith.select %440, %441, %442 : vector<8x32xi1>, vector<8x32xf32>
    %cst_243 = arith.constant 0.000000e+00 : f32
    %444 = vector.broadcast %cst_243 : f32 to vector<8x32xf32>
    %445 = arith.select %440, %444, %438 : vector<8x32xi1>, vector<8x32xf32>
    %446 = arith.index_cast %433 : i32 to index
    %c0_244 = arith.constant 0 : index
    %447 = vector.load %arg10[%446, %c0_244] : memref<128x32xf32, #tpu.memory_space<vmem>>, vector<8x32xf32>
    tpu.vector_store %arg10[%446, %c0_244], %443 {strides = array<i32>} : memref<128x32xf32, #tpu.memory_space<vmem>>, vector<8x32xf32>,
    %c11_i32_245 = arith.constant 11 : i32
    %c8_i32_246 = arith.constant 8 : i32
    %448 = arith.muli %c11_i32_245, %c8_i32_246 : i32
    %449 = tpu.assume_multiple %448, 8 : i32
    %450 = arith.index_cast %449 : i32 to index
    %c0_247 = arith.constant 0 : index
    %451 = vector.load %arg10[%450, %c0_247] : memref<128x32xf32, #tpu.memory_space<vmem>>, vector<8x32xf32>
    %cst_248 = arith.constant 5.000000e-01 : f32
    %452 = vector.broadcast %cst_248 : f32 to vector<8x32xf32>
    %453 = arith.mulf %445, %452 : vector<8x32xf32>
    %454 = arith.addf %453, %451 : vector<8x32xf32>
    %cst_249 = arith.constant 1.000000e+00 : f32
    %455 = vector.broadcast %cst_249 : f32 to vector<8x32xf32>
    %456 = arith.cmpf oge, %454, %455 : vector<8x32xf32>
    %cst_250 = arith.constant 1.000000e+00 : f32
    %cst_251 = arith.constant 0.000000e+00 : f32
    %457 = vector.broadcast %cst_250 : f32 to vector<8x32xf32>
    %458 = vector.broadcast %cst_251 : f32 to vector<8x32xf32>
    %459 = arith.select %456, %457, %458 : vector<8x32xi1>, vector<8x32xf32>
    %cst_252 = arith.constant 0.000000e+00 : f32
    %460 = vector.broadcast %cst_252 : f32 to vector<8x32xf32>
    %461 = arith.select %456, %460, %454 : vector<8x32xi1>, vector<8x32xf32>
    %462 = arith.index_cast %449 : i32 to index
    %c0_253 = arith.constant 0 : index
    %463 = vector.load %arg10[%462, %c0_253] : memref<128x32xf32, #tpu.memory_space<vmem>>, vector<8x32xf32>
    tpu.vector_store %arg10[%462, %c0_253], %459 {strides = array<i32>} : memref<128x32xf32, #tpu.memory_space<vmem>>, vector<8x32xf32>,
    %c12_i32_254 = arith.constant 12 : i32
    %c8_i32_255 = arith.constant 8 : i32
    %464 = arith.muli %c12_i32_254, %c8_i32_255 : i32
    %465 = tpu.assume_multiple %464, 8 : i32
    %466 = arith.index_cast %465 : i32 to index
    %c0_256 = arith.constant 0 : index
    %467 = vector.load %arg10[%466, %c0_256] : memref<128x32xf32, #tpu.memory_space<vmem>>, vector<8x32xf32>
    %cst_257 = arith.constant 5.000000e-01 : f32
    %468 = vector.broadcast %cst_257 : f32 to vector<8x32xf32>
    %469 = arith.mulf %461, %468 : vector<8x32xf32>
    %470 = arith.addf %469, %467 : vector<8x32xf32>
    %cst_258 = arith.constant 1.000000e+00 : f32
    %471 = vector.broadcast %cst_258 : f32 to vector<8x32xf32>
    %472 = arith.cmpf oge, %470, %471 : vector<8x32xf32>
    %cst_259 = arith.constant 1.000000e+00 : f32
    %cst_260 = arith.constant 0.000000e+00 : f32
    %473 = vector.broadcast %cst_259 : f32 to vector<8x32xf32>
    %474 = vector.broadcast %cst_260 : f32 to vector<8x32xf32>
    %475 = arith.select %472, %473, %474 : vector<8x32xi1>, vector<8x32xf32>
    %cst_261 = arith.constant 0.000000e+00 : f32
    %476 = vector.broadcast %cst_261 : f32 to vector<8x32xf32>
    %477 = arith.select %472, %476, %470 : vector<8x32xi1>, vector<8x32xf32>
    %478 = arith.index_cast %465 : i32 to index
    %c0_262 = arith.constant 0 : index
    %479 = vector.load %arg10[%478, %c0_262] : memref<128x32xf32, #tpu.memory_space<vmem>>, vector<8x32xf32>
    tpu.vector_store %arg10[%478, %c0_262], %475 {strides = array<i32>} : memref<128x32xf32, #tpu.memory_space<vmem>>, vector<8x32xf32>,
    %c13_i32_263 = arith.constant 13 : i32
    %c8_i32_264 = arith.constant 8 : i32
    %480 = arith.muli %c13_i32_263, %c8_i32_264 : i32
    %481 = tpu.assume_multiple %480, 8 : i32
    %482 = arith.index_cast %481 : i32 to index
    %c0_265 = arith.constant 0 : index
    %483 = vector.load %arg10[%482, %c0_265] : memref<128x32xf32, #tpu.memory_space<vmem>>, vector<8x32xf32>
    %cst_266 = arith.constant 5.000000e-01 : f32
    %484 = vector.broadcast %cst_266 : f32 to vector<8x32xf32>
    %485 = arith.mulf %477, %484 : vector<8x32xf32>
    %486 = arith.addf %485, %483 : vector<8x32xf32>
    %cst_267 = arith.constant 1.000000e+00 : f32
    %487 = vector.broadcast %cst_267 : f32 to vector<8x32xf32>
    %488 = arith.cmpf oge, %486, %487 : vector<8x32xf32>
    %cst_268 = arith.constant 1.000000e+00 : f32
    %cst_269 = arith.constant 0.000000e+00 : f32
    %489 = vector.broadcast %cst_268 : f32 to vector<8x32xf32>
    %490 = vector.broadcast %cst_269 : f32 to vector<8x32xf32>
    %491 = arith.select %488, %489, %490 : vector<8x32xi1>, vector<8x32xf32>
    %cst_270 = arith.constant 0.000000e+00 : f32
    %492 = vector.broadcast %cst_270 : f32 to vector<8x32xf32>
    %493 = arith.select %488, %492, %486 : vector<8x32xi1>, vector<8x32xf32>
    %494 = arith.index_cast %481 : i32 to index
    %c0_271 = arith.constant 0 : index
    %495 = vector.load %arg10[%494, %c0_271] : memref<128x32xf32, #tpu.memory_space<vmem>>, vector<8x32xf32>
    tpu.vector_store %arg10[%494, %c0_271], %491 {strides = array<i32>} : memref<128x32xf32, #tpu.memory_space<vmem>>, vector<8x32xf32>,
    %c14_i32_272 = arith.constant 14 : i32
    %c8_i32_273 = arith.constant 8 : i32
    %496 = arith.muli %c14_i32_272, %c8_i32_273 : i32
    %497 = tpu.assume_multiple %496, 8 : i32
    %498 = arith.index_cast %497 : i32 to index
    %c0_274 = arith.constant 0 : index
    %499 = vector.load %arg10[%498, %c0_274] : memref<128x32xf32, #tpu.memory_space<vmem>>, vector<8x32xf32>
    %cst_275 = arith.constant 5.000000e-01 : f32
    %500 = vector.broadcast %cst_275 : f32 to vector<8x32xf32>
    %501 = arith.mulf %493, %500 : vector<8x32xf32>
    %502 = arith.addf %501, %499 : vector<8x32xf32>
    %cst_276 = arith.constant 1.000000e+00 : f32
    %503 = vector.broadcast %cst_276 : f32 to vector<8x32xf32>
    %504 = arith.cmpf oge, %502, %503 : vector<8x32xf32>
    %cst_277 = arith.constant 1.000000e+00 : f32
    %cst_278 = arith.constant 0.000000e+00 : f32
    %505 = vector.broadcast %cst_277 : f32 to vector<8x32xf32>
    %506 = vector.broadcast %cst_278 : f32 to vector<8x32xf32>
    %507 = arith.select %504, %505, %506 : vector<8x32xi1>, vector<8x32xf32>
    %cst_279 = arith.constant 0.000000e+00 : f32
    %508 = vector.broadcast %cst_279 : f32 to vector<8x32xf32>
    %509 = arith.select %504, %508, %502 : vector<8x32xi1>, vector<8x32xf32>
    %510 = arith.index_cast %497 : i32 to index
    %c0_280 = arith.constant 0 : index
    %511 = vector.load %arg10[%510, %c0_280] : memref<128x32xf32, #tpu.memory_space<vmem>>, vector<8x32xf32>
    tpu.vector_store %arg10[%510, %c0_280], %507 {strides = array<i32>} : memref<128x32xf32, #tpu.memory_space<vmem>>, vector<8x32xf32>,
    %c15_i32_281 = arith.constant 15 : i32
    %c8_i32_282 = arith.constant 8 : i32
    %512 = arith.muli %c15_i32_281, %c8_i32_282 : i32
    %513 = tpu.assume_multiple %512, 8 : i32
    %514 = arith.index_cast %513 : i32 to index
    %c0_283 = arith.constant 0 : index
    %515 = vector.load %arg10[%514, %c0_283] : memref<128x32xf32, #tpu.memory_space<vmem>>, vector<8x32xf32>
    %cst_284 = arith.constant 5.000000e-01 : f32
    %516 = vector.broadcast %cst_284 : f32 to vector<8x32xf32>
    %517 = arith.mulf %509, %516 : vector<8x32xf32>
    %518 = arith.addf %517, %515 : vector<8x32xf32>
    %cst_285 = arith.constant 1.000000e+00 : f32
    %519 = vector.broadcast %cst_285 : f32 to vector<8x32xf32>
    %520 = arith.cmpf oge, %518, %519 : vector<8x32xf32>
    %cst_286 = arith.constant 1.000000e+00 : f32
    %cst_287 = arith.constant 0.000000e+00 : f32
    %521 = vector.broadcast %cst_286 : f32 to vector<8x32xf32>
    %522 = vector.broadcast %cst_287 : f32 to vector<8x32xf32>
    %523 = arith.select %520, %521, %522 : vector<8x32xi1>, vector<8x32xf32>
    %cst_288 = arith.constant 0.000000e+00 : f32
    %524 = vector.broadcast %cst_288 : f32 to vector<8x32xf32>
    %525 = arith.select %520, %524, %518 : vector<8x32xi1>, vector<8x32xf32>
    %526 = arith.index_cast %513 : i32 to index
    %c0_289 = arith.constant 0 : index
    %527 = vector.load %arg10[%526, %c0_289] : memref<128x32xf32, #tpu.memory_space<vmem>>, vector<8x32xf32>
    tpu.vector_store %arg10[%526, %c0_289], %523 {strides = array<i32>} : memref<128x32xf32, #tpu.memory_space<vmem>>, vector<8x32xf32>,
    %c16_i32_290 = arith.constant 16 : i32
    %c0_291 = arith.constant 0 : index
    %c0_292 = arith.constant 0 : index
    %528 = vector.load %arg10[%c0_291, %c0_292] : memref<128x32xf32, #tpu.memory_space<vmem>>, vector<128x32xf32>
    %c0_293 = arith.constant 0 : index
    %c0_294 = arith.constant 0 : index
    %529 = vector.load %arg6[%c0_293, %c0_294] : memref<32x10xf32, #tpu.memory_space<vmem>>, vector<32x10xf32>
    %cst_295 = arith.constant dense<0.000000e+00> : vector<128x10xf32>
    %530 = tpu.matmul %528, %529, %cst_295 {dimension_numbers = #tpu.dot_dimension_numbers<[1], [0], [0], [1], [0, 0, 1, 1], [], []>} : vector<128x32xf32>, vector<32x10xf32>, vector<128x10xf32> -> vector<128x10xf32>
    %c0_296 = arith.constant 0 : index
    %c0_297 = arith.constant 0 : index
    %531 = vector.load %arg7[%c0_296, %c0_297] : memref<1x10xf32, #tpu.memory_space<vmem>>, vector<1x10xf32>
    %532 = vector.broadcast %531 : vector<1x10xf32> to vector<128x10xf32>
    %533 = arith.addf %530, %532 : vector<128x10xf32>
    %c0_298 = arith.constant 0 : index
    %c0_299 = arith.constant 0 : index
    %534 = vector.load %arg11[%c0_298, %c0_299] : memref<128x10xf32, #tpu.memory_space<vmem>>, vector<128x10xf32>
    tpu.vector_store %arg11[%c0_298, %c0_299], %533 {strides = array<i32>} : memref<128x10xf32, #tpu.memory_space<vmem>>, vector<128x10xf32>,
    %cst_300 = arith.constant 0.000000e+00 : f32
    %535 = vector.broadcast %cst_300 : f32 to vector<8x10xf32>
    %cst_301 = arith.constant 0.000000e+00 : f32
    %536 = vector.broadcast %cst_301 : f32 to vector<8x10xf32>
    %c0_i32_302 = arith.constant 0 : i32
    %c8_i32_303 = arith.constant 8 : i32
    %537 = arith.muli %c0_i32_302, %c8_i32_303 : i32
    %538 = tpu.assume_multiple %537, 8 : i32
    %539 = arith.index_cast %538 : i32 to index
    %c0_304 = arith.constant 0 : index
    %540 = vector.load %arg11[%539, %c0_304] : memref<128x10xf32, #tpu.memory_space<vmem>>, vector<8x10xf32>
    %cst_305 = arith.constant 5.000000e-01 : f32
    %541 = vector.broadcast %cst_305 : f32 to vector<8x10xf32>
    %542 = arith.mulf %535, %541 : vector<8x10xf32>
    %543 = arith.addf %542, %540 : vector<8x10xf32>
    %cst_306 = arith.constant 1.000000e+00 : f32
    %544 = vector.broadcast %cst_306 : f32 to vector<8x10xf32>
    %545 = arith.cmpf oge, %543, %544 : vector<8x10xf32>
    %cst_307 = arith.constant 1.000000e+00 : f32
    %cst_308 = arith.constant 0.000000e+00 : f32
    %546 = vector.broadcast %cst_307 : f32 to vector<8x10xf32>
    %547 = vector.broadcast %cst_308 : f32 to vector<8x10xf32>
    %548 = arith.select %545, %546, %547 : vector<8x10xi1>, vector<8x10xf32>
    %cst_309 = arith.constant 0.000000e+00 : f32
    %549 = vector.broadcast %cst_309 : f32 to vector<8x10xf32>
    %550 = arith.select %545, %549, %543 : vector<8x10xi1>, vector<8x10xf32>
    %551 = arith.addf %536, %548 : vector<8x10xf32>
    %c1_i32_310 = arith.constant 1 : i32
    %c8_i32_311 = arith.constant 8 : i32
    %552 = arith.muli %c1_i32_310, %c8_i32_311 : i32
    %553 = tpu.assume_multiple %552, 8 : i32
    %554 = arith.index_cast %553 : i32 to index
    %c0_312 = arith.constant 0 : index
    %555 = vector.load %arg11[%554, %c0_312] : memref<128x10xf32, #tpu.memory_space<vmem>>, vector<8x10xf32>
    %cst_313 = arith.constant 5.000000e-01 : f32
    %556 = vector.broadcast %cst_313 : f32 to vector<8x10xf32>
    %557 = arith.mulf %550, %556 : vector<8x10xf32>
    %558 = arith.addf %557, %555 : vector<8x10xf32>
    %cst_314 = arith.constant 1.000000e+00 : f32
    %559 = vector.broadcast %cst_314 : f32 to vector<8x10xf32>
    %560 = arith.cmpf oge, %558, %559 : vector<8x10xf32>
    %cst_315 = arith.constant 1.000000e+00 : f32
    %cst_316 = arith.constant 0.000000e+00 : f32
    %561 = vector.broadcast %cst_315 : f32 to vector<8x10xf32>
    %562 = vector.broadcast %cst_316 : f32 to vector<8x10xf32>
    %563 = arith.select %560, %561, %562 : vector<8x10xi1>, vector<8x10xf32>
    %cst_317 = arith.constant 0.000000e+00 : f32
    %564 = vector.broadcast %cst_317 : f32 to vector<8x10xf32>
    %565 = arith.select %560, %564, %558 : vector<8x10xi1>, vector<8x10xf32>
    %566 = arith.addf %551, %563 : vector<8x10xf32>
    %c2_i32_318 = arith.constant 2 : i32
    %c8_i32_319 = arith.constant 8 : i32
    %567 = arith.muli %c2_i32_318, %c8_i32_319 : i32
    %568 = tpu.assume_multiple %567, 8 : i32
    %569 = arith.index_cast %568 : i32 to index
    %c0_320 = arith.constant 0 : index
    %570 = vector.load %arg11[%569, %c0_320] : memref<128x10xf32, #tpu.memory_space<vmem>>, vector<8x10xf32>
    %cst_321 = arith.constant 5.000000e-01 : f32
    %571 = vector.broadcast %cst_321 : f32 to vector<8x10xf32>
    %572 = arith.mulf %565, %571 : vector<8x10xf32>
    %573 = arith.addf %572, %570 : vector<8x10xf32>
    %cst_322 = arith.constant 1.000000e+00 : f32
    %574 = vector.broadcast %cst_322 : f32 to vector<8x10xf32>
    %575 = arith.cmpf oge, %573, %574 : vector<8x10xf32>
    %cst_323 = arith.constant 1.000000e+00 : f32
    %cst_324 = arith.constant 0.000000e+00 : f32
    %576 = vector.broadcast %cst_323 : f32 to vector<8x10xf32>
    %577 = vector.broadcast %cst_324 : f32 to vector<8x10xf32>
    %578 = arith.select %575, %576, %577 : vector<8x10xi1>, vector<8x10xf32>
    %cst_325 = arith.constant 0.000000e+00 : f32
    %579 = vector.broadcast %cst_325 : f32 to vector<8x10xf32>
    %580 = arith.select %575, %579, %573 : vector<8x10xi1>, vector<8x10xf32>
    %581 = arith.addf %566, %578 : vector<8x10xf32>
    %c3_i32_326 = arith.constant 3 : i32
    %c8_i32_327 = arith.constant 8 : i32
    %582 = arith.muli %c3_i32_326, %c8_i32_327 : i32
    %583 = tpu.assume_multiple %582, 8 : i32
    %584 = arith.index_cast %583 : i32 to index
    %c0_328 = arith.constant 0 : index
    %585 = vector.load %arg11[%584, %c0_328] : memref<128x10xf32, #tpu.memory_space<vmem>>, vector<8x10xf32>
    %cst_329 = arith.constant 5.000000e-01 : f32
    %586 = vector.broadcast %cst_329 : f32 to vector<8x10xf32>
    %587 = arith.mulf %580, %586 : vector<8x10xf32>
    %588 = arith.addf %587, %585 : vector<8x10xf32>
    %cst_330 = arith.constant 1.000000e+00 : f32
    %589 = vector.broadcast %cst_330 : f32 to vector<8x10xf32>
    %590 = arith.cmpf oge, %588, %589 : vector<8x10xf32>
    %cst_331 = arith.constant 1.000000e+00 : f32
    %cst_332 = arith.constant 0.000000e+00 : f32
    %591 = vector.broadcast %cst_331 : f32 to vector<8x10xf32>
    %592 = vector.broadcast %cst_332 : f32 to vector<8x10xf32>
    %593 = arith.select %590, %591, %592 : vector<8x10xi1>, vector<8x10xf32>
    %cst_333 = arith.constant 0.000000e+00 : f32
    %594 = vector.broadcast %cst_333 : f32 to vector<8x10xf32>
    %595 = arith.select %590, %594, %588 : vector<8x10xi1>, vector<8x10xf32>
    %596 = arith.addf %581, %593 : vector<8x10xf32>
    %c4_i32_334 = arith.constant 4 : i32
    %c8_i32_335 = arith.constant 8 : i32
    %597 = arith.muli %c4_i32_334, %c8_i32_335 : i32
    %598 = tpu.assume_multiple %597, 8 : i32
    %599 = arith.index_cast %598 : i32 to index
    %c0_336 = arith.constant 0 : index
    %600 = vector.load %arg11[%599, %c0_336] : memref<128x10xf32, #tpu.memory_space<vmem>>, vector<8x10xf32>
    %cst_337 = arith.constant 5.000000e-01 : f32
    %601 = vector.broadcast %cst_337 : f32 to vector<8x10xf32>
    %602 = arith.mulf %595, %601 : vector<8x10xf32>
    %603 = arith.addf %602, %600 : vector<8x10xf32>
    %cst_338 = arith.constant 1.000000e+00 : f32
    %604 = vector.broadcast %cst_338 : f32 to vector<8x10xf32>
    %605 = arith.cmpf oge, %603, %604 : vector<8x10xf32>
    %cst_339 = arith.constant 1.000000e+00 : f32
    %cst_340 = arith.constant 0.000000e+00 : f32
    %606 = vector.broadcast %cst_339 : f32 to vector<8x10xf32>
    %607 = vector.broadcast %cst_340 : f32 to vector<8x10xf32>
    %608 = arith.select %605, %606, %607 : vector<8x10xi1>, vector<8x10xf32>
    %cst_341 = arith.constant 0.000000e+00 : f32
    %609 = vector.broadcast %cst_341 : f32 to vector<8x10xf32>
    %610 = arith.select %605, %609, %603 : vector<8x10xi1>, vector<8x10xf32>
    %611 = arith.addf %596, %608 : vector<8x10xf32>
    %c5_i32_342 = arith.constant 5 : i32
    %c8_i32_343 = arith.constant 8 : i32
    %612 = arith.muli %c5_i32_342, %c8_i32_343 : i32
    %613 = tpu.assume_multiple %612, 8 : i32
    %614 = arith.index_cast %613 : i32 to index
    %c0_344 = arith.constant 0 : index
    %615 = vector.load %arg11[%614, %c0_344] : memref<128x10xf32, #tpu.memory_space<vmem>>, vector<8x10xf32>
    %cst_345 = arith.constant 5.000000e-01 : f32
    %616 = vector.broadcast %cst_345 : f32 to vector<8x10xf32>
    %617 = arith.mulf %610, %616 : vector<8x10xf32>
    %618 = arith.addf %617, %615 : vector<8x10xf32>
    %cst_346 = arith.constant 1.000000e+00 : f32
    %619 = vector.broadcast %cst_346 : f32 to vector<8x10xf32>
    %620 = arith.cmpf oge, %618, %619 : vector<8x10xf32>
    %cst_347 = arith.constant 1.000000e+00 : f32
    %cst_348 = arith.constant 0.000000e+00 : f32
    %621 = vector.broadcast %cst_347 : f32 to vector<8x10xf32>
    %622 = vector.broadcast %cst_348 : f32 to vector<8x10xf32>
    %623 = arith.select %620, %621, %622 : vector<8x10xi1>, vector<8x10xf32>
    %cst_349 = arith.constant 0.000000e+00 : f32
    %624 = vector.broadcast %cst_349 : f32 to vector<8x10xf32>
    %625 = arith.select %620, %624, %618 : vector<8x10xi1>, vector<8x10xf32>
    %626 = arith.addf %611, %623 : vector<8x10xf32>
    %c6_i32_350 = arith.constant 6 : i32
    %c8_i32_351 = arith.constant 8 : i32
    %627 = arith.muli %c6_i32_350, %c8_i32_351 : i32
    %628 = tpu.assume_multiple %627, 8 : i32
    %629 = arith.index_cast %628 : i32 to index
    %c0_352 = arith.constant 0 : index
    %630 = vector.load %arg11[%629, %c0_352] : memref<128x10xf32, #tpu.memory_space<vmem>>, vector<8x10xf32>
    %cst_353 = arith.constant 5.000000e-01 : f32
    %631 = vector.broadcast %cst_353 : f32 to vector<8x10xf32>
    %632 = arith.mulf %625, %631 : vector<8x10xf32>
    %633 = arith.addf %632, %630 : vector<8x10xf32>
    %cst_354 = arith.constant 1.000000e+00 : f32
    %634 = vector.broadcast %cst_354 : f32 to vector<8x10xf32>
    %635 = arith.cmpf oge, %633, %634 : vector<8x10xf32>
    %cst_355 = arith.constant 1.000000e+00 : f32
    %cst_356 = arith.constant 0.000000e+00 : f32
    %636 = vector.broadcast %cst_355 : f32 to vector<8x10xf32>
    %637 = vector.broadcast %cst_356 : f32 to vector<8x10xf32>
    %638 = arith.select %635, %636, %637 : vector<8x10xi1>, vector<8x10xf32>
    %cst_357 = arith.constant 0.000000e+00 : f32
    %639 = vector.broadcast %cst_357 : f32 to vector<8x10xf32>
    %640 = arith.select %635, %639, %633 : vector<8x10xi1>, vector<8x10xf32>
    %641 = arith.addf %626, %638 : vector<8x10xf32>
    %c7_i32_358 = arith.constant 7 : i32
    %c8_i32_359 = arith.constant 8 : i32
    %642 = arith.muli %c7_i32_358, %c8_i32_359 : i32
    %643 = tpu.assume_multiple %642, 8 : i32
    %644 = arith.index_cast %643 : i32 to index
    %c0_360 = arith.constant 0 : index
    %645 = vector.load %arg11[%644, %c0_360] : memref<128x10xf32, #tpu.memory_space<vmem>>, vector<8x10xf32>
    %cst_361 = arith.constant 5.000000e-01 : f32
    %646 = vector.broadcast %cst_361 : f32 to vector<8x10xf32>
    %647 = arith.mulf %640, %646 : vector<8x10xf32>
    %648 = arith.addf %647, %645 : vector<8x10xf32>
    %cst_362 = arith.constant 1.000000e+00 : f32
    %649 = vector.broadcast %cst_362 : f32 to vector<8x10xf32>
    %650 = arith.cmpf oge, %648, %649 : vector<8x10xf32>
    %cst_363 = arith.constant 1.000000e+00 : f32
    %cst_364 = arith.constant 0.000000e+00 : f32
    %651 = vector.broadcast %cst_363 : f32 to vector<8x10xf32>
    %652 = vector.broadcast %cst_364 : f32 to vector<8x10xf32>
    %653 = arith.select %650, %651, %652 : vector<8x10xi1>, vector<8x10xf32>
    %cst_365 = arith.constant 0.000000e+00 : f32
    %654 = vector.broadcast %cst_365 : f32 to vector<8x10xf32>
    %655 = arith.select %650, %654, %648 : vector<8x10xi1>, vector<8x10xf32>
    %656 = arith.addf %641, %653 : vector<8x10xf32>
    %c8_i32_366 = arith.constant 8 : i32
    %c8_i32_367 = arith.constant 8 : i32
    %657 = arith.muli %c8_i32_366, %c8_i32_367 : i32
    %658 = tpu.assume_multiple %657, 8 : i32
    %659 = arith.index_cast %658 : i32 to index
    %c0_368 = arith.constant 0 : index
    %660 = vector.load %arg11[%659, %c0_368] : memref<128x10xf32, #tpu.memory_space<vmem>>, vector<8x10xf32>
    %cst_369 = arith.constant 5.000000e-01 : f32
    %661 = vector.broadcast %cst_369 : f32 to vector<8x10xf32>
    %662 = arith.mulf %655, %661 : vector<8x10xf32>
    %663 = arith.addf %662, %660 : vector<8x10xf32>
    %cst_370 = arith.constant 1.000000e+00 : f32
    %664 = vector.broadcast %cst_370 : f32 to vector<8x10xf32>
    %665 = arith.cmpf oge, %663, %664 : vector<8x10xf32>
    %cst_371 = arith.constant 1.000000e+00 : f32
    %cst_372 = arith.constant 0.000000e+00 : f32
    %666 = vector.broadcast %cst_371 : f32 to vector<8x10xf32>
    %667 = vector.broadcast %cst_372 : f32 to vector<8x10xf32>
    %668 = arith.select %665, %666, %667 : vector<8x10xi1>, vector<8x10xf32>
    %cst_373 = arith.constant 0.000000e+00 : f32
    %669 = vector.broadcast %cst_373 : f32 to vector<8x10xf32>
    %670 = arith.select %665, %669, %663 : vector<8x10xi1>, vector<8x10xf32>
    %671 = arith.addf %656, %668 : vector<8x10xf32>
    %c9_i32_374 = arith.constant 9 : i32
    %c8_i32_375 = arith.constant 8 : i32
    %672 = arith.muli %c9_i32_374, %c8_i32_375 : i32
    %673 = tpu.assume_multiple %672, 8 : i32
    %674 = arith.index_cast %673 : i32 to index
    %c0_376 = arith.constant 0 : index
    %675 = vector.load %arg11[%674, %c0_376] : memref<128x10xf32, #tpu.memory_space<vmem>>, vector<8x10xf32>
    %cst_377 = arith.constant 5.000000e-01 : f32
    %676 = vector.broadcast %cst_377 : f32 to vector<8x10xf32>
    %677 = arith.mulf %670, %676 : vector<8x10xf32>
    %678 = arith.addf %677, %675 : vector<8x10xf32>
    %cst_378 = arith.constant 1.000000e+00 : f32
    %679 = vector.broadcast %cst_378 : f32 to vector<8x10xf32>
    %680 = arith.cmpf oge, %678, %679 : vector<8x10xf32>
    %cst_379 = arith.constant 1.000000e+00 : f32
    %cst_380 = arith.constant 0.000000e+00 : f32
    %681 = vector.broadcast %cst_379 : f32 to vector<8x10xf32>
    %682 = vector.broadcast %cst_380 : f32 to vector<8x10xf32>
    %683 = arith.select %680, %681, %682 : vector<8x10xi1>, vector<8x10xf32>
    %cst_381 = arith.constant 0.000000e+00 : f32
    %684 = vector.broadcast %cst_381 : f32 to vector<8x10xf32>
    %685 = arith.select %680, %684, %678 : vector<8x10xi1>, vector<8x10xf32>
    %686 = arith.addf %671, %683 : vector<8x10xf32>
    %c10_i32_382 = arith.constant 10 : i32
    %c8_i32_383 = arith.constant 8 : i32
    %687 = arith.muli %c10_i32_382, %c8_i32_383 : i32
    %688 = tpu.assume_multiple %687, 8 : i32
    %689 = arith.index_cast %688 : i32 to index
    %c0_384 = arith.constant 0 : index
    %690 = vector.load %arg11[%689, %c0_384] : memref<128x10xf32, #tpu.memory_space<vmem>>, vector<8x10xf32>
    %cst_385 = arith.constant 5.000000e-01 : f32
    %691 = vector.broadcast %cst_385 : f32 to vector<8x10xf32>
    %692 = arith.mulf %685, %691 : vector<8x10xf32>
    %693 = arith.addf %692, %690 : vector<8x10xf32>
    %cst_386 = arith.constant 1.000000e+00 : f32
    %694 = vector.broadcast %cst_386 : f32 to vector<8x10xf32>
    %695 = arith.cmpf oge, %693, %694 : vector<8x10xf32>
    %cst_387 = arith.constant 1.000000e+00 : f32
    %cst_388 = arith.constant 0.000000e+00 : f32
    %696 = vector.broadcast %cst_387 : f32 to vector<8x10xf32>
    %697 = vector.broadcast %cst_388 : f32 to vector<8x10xf32>
    %698 = arith.select %695, %696, %697 : vector<8x10xi1>, vector<8x10xf32>
    %cst_389 = arith.constant 0.000000e+00 : f32
    %699 = vector.broadcast %cst_389 : f32 to vector<8x10xf32>
    %700 = arith.select %695, %699, %693 : vector<8x10xi1>, vector<8x10xf32>
    %701 = arith.addf %686, %698 : vector<8x10xf32>
    %c11_i32_390 = arith.constant 11 : i32
    %c8_i32_391 = arith.constant 8 : i32
    %702 = arith.muli %c11_i32_390, %c8_i32_391 : i32
    %703 = tpu.assume_multiple %702, 8 : i32
    %704 = arith.index_cast %703 : i32 to index
    %c0_392 = arith.constant 0 : index
    %705 = vector.load %arg11[%704, %c0_392] : memref<128x10xf32, #tpu.memory_space<vmem>>, vector<8x10xf32>
    %cst_393 = arith.constant 5.000000e-01 : f32
    %706 = vector.broadcast %cst_393 : f32 to vector<8x10xf32>
    %707 = arith.mulf %700, %706 : vector<8x10xf32>
    %708 = arith.addf %707, %705 : vector<8x10xf32>
    %cst_394 = arith.constant 1.000000e+00 : f32
    %709 = vector.broadcast %cst_394 : f32 to vector<8x10xf32>
    %710 = arith.cmpf oge, %708, %709 : vector<8x10xf32>
    %cst_395 = arith.constant 1.000000e+00 : f32
    %cst_396 = arith.constant 0.000000e+00 : f32
    %711 = vector.broadcast %cst_395 : f32 to vector<8x10xf32>
    %712 = vector.broadcast %cst_396 : f32 to vector<8x10xf32>
    %713 = arith.select %710, %711, %712 : vector<8x10xi1>, vector<8x10xf32>
    %cst_397 = arith.constant 0.000000e+00 : f32
    %714 = vector.broadcast %cst_397 : f32 to vector<8x10xf32>
    %715 = arith.select %710, %714, %708 : vector<8x10xi1>, vector<8x10xf32>
    %716 = arith.addf %701, %713 : vector<8x10xf32>
    %c12_i32_398 = arith.constant 12 : i32
    %c8_i32_399 = arith.constant 8 : i32
    %717 = arith.muli %c12_i32_398, %c8_i32_399 : i32
    %718 = tpu.assume_multiple %717, 8 : i32
    %719 = arith.index_cast %718 : i32 to index
    %c0_400 = arith.constant 0 : index
    %720 = vector.load %arg11[%719, %c0_400] : memref<128x10xf32, #tpu.memory_space<vmem>>, vector<8x10xf32>
    %cst_401 = arith.constant 5.000000e-01 : f32
    %721 = vector.broadcast %cst_401 : f32 to vector<8x10xf32>
    %722 = arith.mulf %715, %721 : vector<8x10xf32>
    %723 = arith.addf %722, %720 : vector<8x10xf32>
    %cst_402 = arith.constant 1.000000e+00 : f32
    %724 = vector.broadcast %cst_402 : f32 to vector<8x10xf32>
    %725 = arith.cmpf oge, %723, %724 : vector<8x10xf32>
    %cst_403 = arith.constant 1.000000e+00 : f32
    %cst_404 = arith.constant 0.000000e+00 : f32
    %726 = vector.broadcast %cst_403 : f32 to vector<8x10xf32>
    %727 = vector.broadcast %cst_404 : f32 to vector<8x10xf32>
    %728 = arith.select %725, %726, %727 : vector<8x10xi1>, vector<8x10xf32>
    %cst_405 = arith.constant 0.000000e+00 : f32
    %729 = vector.broadcast %cst_405 : f32 to vector<8x10xf32>
    %730 = arith.select %725, %729, %723 : vector<8x10xi1>, vector<8x10xf32>
    %731 = arith.addf %716, %728 : vector<8x10xf32>
    %c13_i32_406 = arith.constant 13 : i32
    %c8_i32_407 = arith.constant 8 : i32
    %732 = arith.muli %c13_i32_406, %c8_i32_407 : i32
    %733 = tpu.assume_multiple %732, 8 : i32
    %734 = arith.index_cast %733 : i32 to index
    %c0_408 = arith.constant 0 : index
    %735 = vector.load %arg11[%734, %c0_408] : memref<128x10xf32, #tpu.memory_space<vmem>>, vector<8x10xf32>
    %cst_409 = arith.constant 5.000000e-01 : f32
    %736 = vector.broadcast %cst_409 : f32 to vector<8x10xf32>
    %737 = arith.mulf %730, %736 : vector<8x10xf32>
    %738 = arith.addf %737, %735 : vector<8x10xf32>
    %cst_410 = arith.constant 1.000000e+00 : f32
    %739 = vector.broadcast %cst_410 : f32 to vector<8x10xf32>
    %740 = arith.cmpf oge, %738, %739 : vector<8x10xf32>
    %cst_411 = arith.constant 1.000000e+00 : f32
    %cst_412 = arith.constant 0.000000e+00 : f32
    %741 = vector.broadcast %cst_411 : f32 to vector<8x10xf32>
    %742 = vector.broadcast %cst_412 : f32 to vector<8x10xf32>
    %743 = arith.select %740, %741, %742 : vector<8x10xi1>, vector<8x10xf32>
    %cst_413 = arith.constant 0.000000e+00 : f32
    %744 = vector.broadcast %cst_413 : f32 to vector<8x10xf32>
    %745 = arith.select %740, %744, %738 : vector<8x10xi1>, vector<8x10xf32>
    %746 = arith.addf %731, %743 : vector<8x10xf32>
    %c14_i32_414 = arith.constant 14 : i32
    %c8_i32_415 = arith.constant 8 : i32
    %747 = arith.muli %c14_i32_414, %c8_i32_415 : i32
    %748 = tpu.assume_multiple %747, 8 : i32
    %749 = arith.index_cast %748 : i32 to index
    %c0_416 = arith.constant 0 : index
    %750 = vector.load %arg11[%749, %c0_416] : memref<128x10xf32, #tpu.memory_space<vmem>>, vector<8x10xf32>
    %cst_417 = arith.constant 5.000000e-01 : f32
    %751 = vector.broadcast %cst_417 : f32 to vector<8x10xf32>
    %752 = arith.mulf %745, %751 : vector<8x10xf32>
    %753 = arith.addf %752, %750 : vector<8x10xf32>
    %cst_418 = arith.constant 1.000000e+00 : f32
    %754 = vector.broadcast %cst_418 : f32 to vector<8x10xf32>
    %755 = arith.cmpf oge, %753, %754 : vector<8x10xf32>
    %cst_419 = arith.constant 1.000000e+00 : f32
    %cst_420 = arith.constant 0.000000e+00 : f32
    %756 = vector.broadcast %cst_419 : f32 to vector<8x10xf32>
    %757 = vector.broadcast %cst_420 : f32 to vector<8x10xf32>
    %758 = arith.select %755, %756, %757 : vector<8x10xi1>, vector<8x10xf32>
    %cst_421 = arith.constant 0.000000e+00 : f32
    %759 = vector.broadcast %cst_421 : f32 to vector<8x10xf32>
    %760 = arith.select %755, %759, %753 : vector<8x10xi1>, vector<8x10xf32>
    %761 = arith.addf %746, %758 : vector<8x10xf32>
    %c15_i32_422 = arith.constant 15 : i32
    %c8_i32_423 = arith.constant 8 : i32
    %762 = arith.muli %c15_i32_422, %c8_i32_423 : i32
    %763 = tpu.assume_multiple %762, 8 : i32
    %764 = arith.index_cast %763 : i32 to index
    %c0_424 = arith.constant 0 : index
    %765 = vector.load %arg11[%764, %c0_424] : memref<128x10xf32, #tpu.memory_space<vmem>>, vector<8x10xf32>
    %cst_425 = arith.constant 5.000000e-01 : f32
    %766 = vector.broadcast %cst_425 : f32 to vector<8x10xf32>
    %767 = arith.mulf %760, %766 : vector<8x10xf32>
    %768 = arith.addf %767, %765 : vector<8x10xf32>
    %cst_426 = arith.constant 1.000000e+00 : f32
    %769 = vector.broadcast %cst_426 : f32 to vector<8x10xf32>
    %770 = arith.cmpf oge, %768, %769 : vector<8x10xf32>
    %cst_427 = arith.constant 1.000000e+00 : f32
    %cst_428 = arith.constant 0.000000e+00 : f32
    %771 = vector.broadcast %cst_427 : f32 to vector<8x10xf32>
    %772 = vector.broadcast %cst_428 : f32 to vector<8x10xf32>
    %773 = arith.select %770, %771, %772 : vector<8x10xi1>, vector<8x10xf32>
    %cst_429 = arith.constant 0.000000e+00 : f32
    %774 = vector.broadcast %cst_429 : f32 to vector<8x10xf32>
    %775 = arith.select %770, %774, %768 : vector<8x10xi1>, vector<8x10xf32>
    %776 = arith.addf %761, %773 : vector<8x10xf32>
    %c16_i32_430 = arith.constant 16 : i32
    %cst_431 = arith.constant 6.250000e-02 : f32
    %777 = vector.broadcast %cst_431 : f32 to vector<8x10xf32>
    %778 = arith.mulf %776, %777 : vector<8x10xf32>
    %c0_432 = arith.constant 0 : index
    %c0_433 = arith.constant 0 : index
    %779 = vector.load %arg8[%c0_432, %c0_433] : memref<8x10xf32, #tpu.memory_space<vmem>>, vector<8x10xf32>
    tpu.vector_store %arg8[%c0_432, %c0_433], %778 {strides = array<i32>} : memref<8x10xf32, #tpu.memory_space<vmem>>, vector<8x10xf32>,
    return
  }
  func.func @transform_0(%arg0: i32) -> (i32, i32) {
    %c0_i32 = arith.constant 0 : i32
    %c0_i32_0 = arith.constant 0 : i32
    %c0_i32_1 = arith.constant 0 : i32
    return %c0_i32, %c0_i32_0 : i32, i32
  }
  func.func @transform_1(%arg0: i32) -> (i32, i32) {
    %c0_i32 = arith.constant 0 : i32
    %c0_i32_0 = arith.constant 0 : i32
    %c0_i32_1 = arith.constant 0 : i32
    return %c0_i32, %c0_i32_0 : i32, i32
  }
  func.func @transform_2(%arg0: i32) -> (i32, i32) {
    %c0_i32 = arith.constant 0 : i32
    %c0_i32_0 = arith.constant 0 : i32
    %c0_i32_1 = arith.constant 0 : i32
    return %c0_i32, %c0_i32_0 : i32, i32
  }
  func.func @transform_3(%arg0: i32) -> (i32, i32) {
    %c0_i32 = arith.constant 0 : i32
    %c0_i32_0 = arith.constant 0 : i32
    %c0_i32_1 = arith.constant 0 : i32
    return %c0_i32, %c0_i32_0 : i32, i32
  }
  func.func @transform_4(%arg0: i32) -> (i32, i32) {
    %c0_i32 = arith.constant 0 : i32
    %c0_i32_0 = arith.constant 0 : i32
    %c0_i32_1 = arith.constant 0 : i32
    return %c0_i32, %c0_i32_0 : i32, i32
  }
  func.func @transform_5(%arg0: i32) -> (i32, i32) {
    %c0_i32 = arith.constant 0 : i32
    %c0_i32_0 = arith.constant 0 : i32
    %c0_i32_1 = arith.constant 0 : i32
    return %c0_i32, %c0_i32_0 : i32, i32
  }
  func.func @transform_6(%arg0: i32) -> (i32, i32) {
    %c0_i32 = arith.constant 0 : i32
    %c0_i32_0 = arith.constant 0 : i32
    %c0_i32_1 = arith.constant 0 : i32
    return %c0_i32, %c0_i32_0 : i32, i32
  }
  func.func @transform_7(%arg0: i32) -> (i32, i32) {
    %c0_i32 = arith.constant 0 : i32
    %c0_i32_0 = arith.constant 0 : i32
    %c0_i32_1 = arith.constant 0 : i32
    return %c0_i32, %c0_i32_0 : i32, i32
  }
}

</mosaic_0001>

<bundles_post_ra>
// kernel: tpu_custom_call.1
= control target key start
LH: loop header
LB: loop body
LE: loop exit
PB: predicated region body
PF: predicated region fallthrough
CT: control target
= control target key end

     0   :  { %vm100_vm0 = vcmask 1044480   ;;  %vm51_vm1 = vcmask 39936   ;;  %s1763_s0 = inlined_call_operand.vmem [shape: f32[128,5], index: 0, kind: input, shape index: {}]   ;;  %s1764_s1 = inlined_call_operand.vmem [shape: f32[5,16], index: 1, kind: input, shape index: {}]   ;;  %s1765_s2 = inlined_call_operand.vmem [shape: f32[1,16], index: 2, kind: input, shape index: {}]   ;;  %s1766_s3 = inlined_call_operand.vmem [shape: f32[16,32], index: 3, kind: input, shape index: {}]   ;;  %s1767_s4 = inlined_call_operand.vmem [shape: f32[1,32], index: 4, kind: input, shape index: {}]   ;;  %s1768_s5 = inlined_call_operand.vmem [shape: f32[32,10], index: 5, kind: input, shape index: {}]   ;;  %s1769_s6 = inlined_call_operand.vmem [shape: f32[1,10], index: 6, kind: input, shape index: {}]   ;;  %s1770_s7 = inlined_call_operand.hbm [shape: f32[8,10], index: 7, kind: output, shape index: {}]  }
   0x1   :  { %v43_v0 = vld [vmem:[%s1764_s1] sm:$0x1f]  ;;  %v28_v2 = vld [vmem:[%s1763_s0 + $0x8] sm:$0xff]  ;;  %v29_v3 = vld [vmem:[%s1763_s0 + $0x10] sm:$0xff] }
   0x2   :  { %v27_v1 = vld [vmem:[%s1763_s0] sm:$0xff]  ;;  %1236 = vmatprep.subr.msk.mxu0 %vm100_vm0, %v43_v0  ;;  %1334 = vmatprep.subr.msk.mxu1 %vm100_vm0, %v43_v0  ;;  %v36_v5 = vld [vmem:[%s1763_s0 + $0x48] sm:$0xff]  ;;  %v37_v6 = vld [vmem:[%s1763_s0 + $0x50] sm:$0xff] }
   0x3   :  { %1238 = vmatprep.mubr.msk.f32.mxu0 %vm51_vm1, %v27_v1  ;;  %1237 = vmatpush3.msk.msra.mxu0 %vm100_vm0, %v43_v0  ;;  %v35_v4 = vld [vmem:[%s1763_s0 + $0x40] sm:$0xff]  ;;  %v30_v7 = vld [vmem:[%s1763_s0 + $0x18] sm:$0xff] }
   0x4   :  { %1239 = vmatmul.mubr.msk.f32.vlgmr.msra.gmra.mrb[0].mxu0 %vm51_vm1, %v28_v2  ;;  %1335 = vmatpush3.msk.msra.mxu1 %vm100_vm0, %v43_v0  ;;  %v31_v8 = vld [vmem:[%s1763_s0 + $0x20] sm:$0xff] }
   0x5   :  { %1241 = vmatprep.mubr.msk.f32.mxu0 %vm51_vm1, %v29_v3  ;;  %1250 = vmatprep.mubr.msk.f32.mxu1 %vm51_vm1, %v35_v4 }
   0x6   :  { %1251 = vmatmul.mubr.msk.f32.vlgmr.msra.gmra.mrb[0].mxu1 %vm51_vm1, %v36_v5 }
   0x7   :  { %12 = vsyncpa [#allocation6], 0  ;;  %1253 = vmatprep.mubr.msk.f32.mxu1 %vm51_vm1, %v37_v6  ;;  %v38_v9 = vld [vmem:[%s1763_s0 + $0x58] sm:$0xff]  ;;  %v39_v10 = vld [vmem:[%s1763_s0 + $0x60] sm:$0xff]  ;;  %vm249_vm2 = vcmask 130048   ;;  %v1362_v47 = vmov 0.0  }
   0x8   :  { %1242 = vmatmul.mubr.msk.f32.gmra.mrb[2].mxu0 %vm51_vm1, %v30_v7  ;;  %v32_v11 = vld [vmem:[%s1763_s0 + $0x28] sm:$0xff]  ;;  %v33_v12 = vld [vmem:[%s1763_s0 + $0x30] sm:$0xff]  ;;  %v34_v15 = vld [vmem:[%s1763_s0 + $0x38] sm:$0xff] }
   0x9   :  { %1244 = vmatprep.mubr.msk.f32.mxu0 %vm51_vm1, %v31_v8  ;;  %v40_v13 = vld [vmem:[%s1763_s0 + $0x68] sm:$0xff]  ;;  %v41_v14 = vld [vmem:[%s1763_s0 + $0x70] sm:$0xff]  ;;  %v42_v16 = vld [vmem:[%s1763_s0 + $0x78] sm:$0xff] }
   0xa   :  { %1254 = vmatmul.mubr.msk.f32.gmra.mrb[2].mxu1 %vm51_vm1, %v38_v9  ;;  %v407_v17 = vld [vmem:[%s1766_s3] sm:$0xff]  ;;  %v408_v18 = vld [vmem:[%s1766_s3 + $0x8] sm:$0xff] }
   0xb   :  { %1256 = vmatprep.mubr.msk.f32.mxu1 %vm51_vm1, %v39_v10  ;;  %v1322_v19 = vpack.c.bf16 %v408_v18, %v407_v17  ;;  %v1129_v20 = vld [vmem:[%s1765_s2] ss:$0 sm:$0xff] }
   0xc   :  { %1245 = vmatmul.mubr.msk.f32.gmra.mrb[4].mxu0 %vm51_vm1, %v32_v11 }
   0xd   :  { %1247 = vmatprep.mubr.msk.f32.mxu0 %vm51_vm1, %v33_v12  ;;  %1323 = vmatprep.subr.bf16.mxu1 %v1322_v19 }
   0xe   :  { %1257 = vmatmul.mubr.msk.f32.gmra.mrb[4].mxu1 %vm51_vm1, %v40_v13 }
   0xf   :  { %1259 = vmatprep.mubr.msk.f32.mxu1 %vm51_vm1, %v41_v14  ;;  %1325 = vmatpush3.bf16.msra.mxu1 %v1322_v19 }
  0x10   :  { %1248 = vmatmul.mubr.msk.f32.gmra.mrb[6].mxu0 %vm51_vm1, %v34_v15 }
  0x12   :  { %1260 = vmatmul.mubr.msk.f32.gmra.mrb[6].mxu1 %vm51_vm1, %v42_v16 }
  0xd7   :  { %v1240_v21 = vpop.f32.mrb[0].mxu0 }
  0xd8   :  { %v176_v22 = vadd.f32 %v1240_v21, %v1129_v20  ;;  %v170_v23 = vpop.f32.mrb[1].mxu0 }
  0xd9   :  { %v171_v24 = vadd.f32 %v1129_v20, %v170_v23  ;;  %v1252_v25 = vpop.f32.mrb[0].mxu1 }
  0xda   :  { %251 = vst.msk [vmem:[#allocation2 + $0x8] sm:$0xff] %vm249_vm2, %v176_v22  ;;  %v216_v26 = vadd.f32 %v1252_v25, %v1129_v20  ;;  %v210_v27 = vpop.f32.mrb[1].mxu1 }
  0xdb   :  { %250 = vst.msk [vmem:[#allocation2] sm:$0xff] %vm249_vm2, %v171_v24  ;;  %v1243_v28 = vpop.f32.mrb[2].mxu0  ;;  %v211_v29 = vadd.f32 %v1129_v20, %v210_v27 }
  0xdc   :  { %v186_v30 = vadd.f32 %v1243_v28, %v1129_v20  ;;  %v180_v31 = vpop.f32.mrb[3].mxu0  ;;  %259 = vst.msk [vmem:[#allocation2 + $0x48] sm:$0xff] %vm249_vm2, %v216_v26 }
  0xdd   :  { %v181_v32 = vadd.f32 %v1129_v20, %v180_v31  ;;  %258 = vst.msk [vmem:[#allocation2 + $0x40] sm:$0xff] %vm249_vm2, %v211_v29  ;;  %v1255_v33 = vpop.f32.mrb[2].mxu1 }
  0xde   :  { %253 = vst.msk [vmem:[#allocation2 + $0x18] sm:$0xff] %vm249_vm2, %v186_v30  ;;  %v226_v34 = vadd.f32 %v1255_v33, %v1129_v20  ;;  %v220_v35 = vpop.f32.mrb[3].mxu1 }
  0xdf   :  { %252 = vst.msk [vmem:[#allocation2 + $0x10] sm:$0xff] %vm249_vm2, %v181_v32  ;;  %v1246_v36 = vpop.f32.mrb[4].mxu0  ;;  %v221_v37 = vadd.f32 %v1129_v20, %v220_v35 }
  0xe0   :  { %v196_v38 = vadd.f32 %v1246_v36, %v1129_v20  ;;  %v190_v39 = vpop.f32.mrb[5].mxu0  ;;  %261 = vst.msk [vmem:[#allocation2 + $0x58] sm:$0xff] %vm249_vm2, %v226_v34 }
  0xe1   :  { %v191_v40 = vadd.f32 %v1129_v20, %v190_v39  ;;  %260 = vst.msk [vmem:[#allocation2 + $0x50] sm:$0xff] %vm249_vm2, %v221_v37  ;;  %v1258_v41 = vpop.f32.mrb[4].mxu1  ;;  %v273_v55 = vld [vmem:[#allocation2 + $0x8] sm:$0xff] }
  0xe2   :  { %v266_v42 = vld [vmem:[#allocation2] sm:$0xff]  ;;  %255 = vst.msk [vmem:[#allocation2 + $0x28] sm:$0xff] %vm249_vm2, %v196_v38  ;;  %v236_v43 = vadd.f32 %v1258_v41, %v1129_v20  ;;  %v230_v44 = vpop.f32.mrb[5].mxu1 }
  0xe3   :  { %vm268_vm3 = vcmp.ge.f32.partialorder %v266_v42, 1.0  ;;  %254 = vst.msk [vmem:[#allocation2 + $0x20] sm:$0xff] %vm249_vm2, %v191_v40  ;;  %v1249_v45 = vpop.f32.mrb[6].mxu0  ;;  %v231_v46 = vadd.f32 %v1129_v20, %v230_v44  ;;  %v337_v41 = vld [vmem:[#allocation2 + $0x48] sm:$0xff] }
  0xe4   :  { %v269_v48 = vsel %vm268_vm3, 1.0, %v1362_v47  ;;  %v270_v49 = vsel %vm268_vm3, 0.0, %v266_v42  ;;  %v206_v50 = vadd.f32 %v1249_v45, %v1129_v20  ;;  %v200_v51 = vpop.f32.mrb[7].mxu0  ;;  %263 = vst.msk [vmem:[#allocation2 + $0x68] sm:$0xff] %vm249_vm2, %v236_v43  ;;  %v329_v34 = vld [vmem:[#allocation2 + $0x40] sm:$0xff] }
  0xe5   :  { %271 = vst.msk [vmem:[#allocation2] sm:$0xff] %vm249_vm2, %v269_v48  ;;  %v274_v52 = vmul.f32 0.5, %v270_v49  ;;  %v201_v53 = vadd.f32 %v1129_v20, %v200_v51  ;;  %262 = vst.msk [vmem:[#allocation2 + $0x60] sm:$0xff] %vm249_vm2, %v231_v46  ;;  %v1261_v54 = vpop.f32.mrb[6].mxu1  ;;  %v289_v5 = vld [vmem:[#allocation2 + $0x18] sm:$0xff] }
  0xe6   :  { %257 = vst.msk [vmem:[#allocation2 + $0x38] sm:$0xff] %vm249_vm2, %v206_v50  ;;  %v246_v56 = vadd.f32 %v1261_v54, %v1129_v20  ;;  %v240_v57 = vpop.f32.mrb[7].mxu1  ;;  %v281_v62 = vld [vmem:[#allocation2 + $0x10] sm:$0xff] }
  0xe7   :  { %v275_v58 = vadd.f32 %v274_v52, %v273_v55  ;;  %256 = vst.msk [vmem:[#allocation2 + $0x30] sm:$0xff] %vm249_vm2, %v201_v53  ;;  %v241_v59 = vadd.f32 %v1129_v20, %v240_v57  ;;  %v353_v54 = vld [vmem:[#allocation2 + $0x58] sm:$0xff] }
  0xe8   :  { %265 = vst.msk [vmem:[#allocation2 + $0x78] sm:$0xff] %vm249_vm2, %v246_v56  ;;  %v345_v46 = vld [vmem:[#allocation2 + $0x50] sm:$0xff] }
  0xe9   :  { %vm276_vm4 = vcmp.ge.f32.partialorder %v275_v58, 1.0  ;;  %264 = vst.msk [vmem:[#allocation2 + $0x70] sm:$0xff] %vm249_vm2, %v241_v59  ;;  %v305_v17 = vld [vmem:[#allocation2 + $0x28] sm:$0xff] }
  0xea   :  { %v277_v60 = vsel %vm276_vm4, 1.0, %v1362_v47  ;;  %v278_v61 = vsel %vm276_vm4, 0.0, %v275_v58  ;;  %v297_v10 = vld [vmem:[#allocation2 + $0x20] sm:$0xff] }
  0xeb   :  { %279 = vst.msk [vmem:[#allocation2 + $0x8] sm:$0xff] %vm249_vm2, %v277_v60  ;;  %v282_v63 = vmul.f32 0.5, %v278_v61 }
  0xec   :  { %v391_v0 = vld [vmem:[#allocation2] sm:$0xff] }
  0xed   :  { %v283_v1 = vadd.f32 %v282_v63, %v281_v62  ;;  %1266 = vmatprep.mubr.msk.f32.mxu1 %vm249_vm2, %v391_v0  ;;  %v321_v29 = vld [vmem:[#allocation2 + $0x38] sm:$0xff]  ;;  %v361_v59 = vld [vmem:[#allocation2 + $0x60] sm:$0xff] }
  0xee   :  { %v313_v22 = vld [vmem:[#allocation2 + $0x30] sm:$0xff] }
  0xef   :  { %vm284_vm5 = vcmp.ge.f32.partialorder %v283_v1, 1.0 }
  0xf0   :  { %v285_v2 = vsel %vm284_vm5, 1.0, %v1362_v47  ;;  %v286_v3 = vsel %vm284_vm5, 0.0, %v283_v1 }
  0xf1   :  { %287 = vst.msk [vmem:[#allocation2 + $0x10] sm:$0xff] %vm249_vm2, %v285_v2  ;;  %v290_v4 = vmul.f32 0.5, %v286_v3  ;;  %v369_v2 = vld [vmem:[#allocation2 + $0x68] sm:$0xff] }
  0xf2   :  { %v392_v6 = vld [vmem:[#allocation2 + $0x8] sm:$0xff] }
  0xf3   :  { %v291_v7 = vadd.f32 %v290_v4, %v289_v5  ;;  %1267 = vmatmul.mubr.msk.f32.vlgmr.msra.gmra.mrb[8].mxu1 %vm249_vm2, %v392_v6 }
  0xf5   :  { %vm292_vm6 = vcmp.ge.f32.partialorder %v291_v7, 1.0 }
  0xf6   :  { %v293_v8 = vsel %vm292_vm6, 1.0, %v1362_v47  ;;  %v294_v9 = vsel %vm292_vm6, 0.0, %v291_v7  ;;  %v377_v7 = vld [vmem:[#allocation2 + $0x70] sm:$0xff] }
  0xf7   :  { %295 = vst.msk [vmem:[#allocation2 + $0x18] sm:$0xff] %vm249_vm2, %v293_v8  ;;  %v298_v11 = vmul.f32 0.5, %v294_v9 }
  0xf8   :  { %v393_v12 = vld [vmem:[#allocation2 + $0x10] sm:$0xff] }
  0xf9   :  { %v299_v13 = vadd.f32 %v298_v11, %v297_v10  ;;  %1269 = vmatprep.mubr.msk.f32.mxu1 %vm249_vm2, %v393_v12 }
  0xfb   :  { %vm300_vm7 = vcmp.ge.f32.partialorder %v299_v13, 1.0 }
  0xfc   :  { %v301_v14 = vsel %vm300_vm7, 1.0, %v1362_v47  ;;  %v302_v15 = vsel %vm300_vm7, 0.0, %v299_v13 }
  0xfd   :  { %303 = vst.msk [vmem:[#allocation2 + $0x20] sm:$0xff] %vm249_vm2, %v301_v14  ;;  %v306_v16 = vmul.f32 0.5, %v302_v15  ;;  %v385_v14 = vld [vmem:[#allocation2 + $0x78] sm:$0xff] }
  0xfe   :  { %v394_v18 = vld [vmem:[#allocation2 + $0x18] sm:$0xff] }
  0xff   :  { %v307_v19 = vadd.f32 %v306_v16, %v305_v17  ;;  %1270 = vmatmul.mubr.msk.f32.gmra.mrb[10].mxu1 %vm249_vm2, %v394_v18 }
 0x101   :  { %vm308_vm8 = vcmp.ge.f32.partialorder %v307_v19, 1.0 }
 0x102   :  { %v309_v20 = vsel %vm308_vm8, 1.0, %v1362_v47  ;;  %v310_v21 = vsel %vm308_vm8, 0.0, %v307_v19 }
 0x103   :  { %311 = vst.msk [vmem:[#allocation2 + $0x28] sm:$0xff] %vm249_vm2, %v309_v20  ;;  %v314_v23 = vmul.f32 0.5, %v310_v21  ;;  %v767_v20 = vld [vmem:[%s1768_s5] sm:$0xff]  ;;  %v768_v21 = vld [vmem:[%s1768_s5 + $0x8] sm:$0xff] }
 0x104   :  { %v395_v24 = vld [vmem:[#allocation2 + $0x20] sm:$0xff] }
 0x105   :  { %v315_v25 = vadd.f32 %v314_v23, %v313_v22  ;;  %1272 = vmatprep.mubr.msk.f32.mxu1 %vm249_vm2, %v395_v24  ;;  %v1326_v22 = vpack.c.bf16 %v768_v21, %v767_v20  ;;  %v769_v23 = vld [vmem:[%s1768_s5 + $0x10] sm:$0xff]  ;;  %v770_v24 = vld [vmem:[%s1768_s5 + $0x18] sm:$0xff] }
 0x107   :  { %vm316_vm9 = vcmp.ge.f32.partialorder %v315_v25, 1.0  ;;  %1327 = vmatprep.subr.bf16.mxu0 %v1326_v22 }
 0x108   :  { %v317_v26 = vsel %vm316_vm9, 1.0, %v1362_v47  ;;  %v318_v27 = vsel %vm316_vm9, 0.0, %v315_v25  ;;  %1329 = vmatpush3.bf16.msra.mxu0 %v1326_v22  ;;  %v1330_v25 = vpack.c.bf16 %v770_v24, %v769_v23 }
 0x109   :  { %319 = vst.msk [vmem:[#allocation2 + $0x30] sm:$0xff] %vm249_vm2, %v317_v26  ;;  %v322_v28 = vmul.f32 0.5, %v318_v27  ;;  %v1559_v26 = vld [vmem:[%s1767_s4] ss:$0 sm:$0xff] }
 0x10a   :  { %v396_v30 = vld [vmem:[#allocation2 + $0x28] sm:$0xff]  ;;  %1331 = vmatprep.subr.bf16.mxu0 %v1330_v25 }
 0x10b   :  { %v323_v31 = vadd.f32 %v322_v28, %v321_v29  ;;  %1273 = vmatmul.mubr.msk.f32.gmra.mrb[12].mxu1 %vm249_vm2, %v396_v30 }
 0x10c   :  { %1333 = vmatpush3.bf16.msra.mxu0 %v1330_v25 }
 0x10d   :  { %vm324_vm10 = vcmp.ge.f32.partialorder %v323_v31, 1.0 }
 0x10e   :  { %v325_v32 = vsel %vm324_vm10, 1.0, %v1362_v47  ;;  %v326_v33 = vsel %vm324_vm10, 0.0, %v323_v31 }
 0x10f   :  { %327 = vst.msk [vmem:[#allocation2 + $0x38] sm:$0xff] %vm249_vm2, %v325_v32  ;;  %v330_v35 = vmul.f32 0.5, %v326_v33 }
 0x110   :  { %v397_v36 = vld [vmem:[#allocation2 + $0x30] sm:$0xff] }
 0x111   :  { %v331_v37 = vadd.f32 %v330_v35, %v329_v34  ;;  %1275 = vmatprep.mubr.msk.f32.mxu1 %vm249_vm2, %v397_v36 }
 0x113   :  { %vm332_vm11 = vcmp.ge.f32.partialorder %v331_v37, 1.0 }
 0x114   :  { %v333_v38 = vsel %vm332_vm11, 1.0, %v1362_v47  ;;  %v334_v39 = vsel %vm332_vm11, 0.0, %v331_v37 }
 0x115   :  { %335 = vst.msk [vmem:[#allocation2 + $0x40] sm:$0xff] %vm249_vm2, %v333_v38  ;;  %v338_v40 = vmul.f32 0.5, %v334_v39 }
 0x116   :  { %v398_v42 = vld [vmem:[#allocation2 + $0x38] sm:$0xff] }
 0x117   :  { %v339_v43 = vadd.f32 %v338_v40, %v337_v41  ;;  %1276 = vmatmul.mubr.msk.f32.gmra.mrb[14].mxu1 %vm249_vm2, %v398_v42 }
 0x119   :  { %vm340_vm12 = vcmp.ge.f32.partialorder %v339_v43, 1.0 }
 0x11a   :  { %v341_v44 = vsel %vm340_vm12, 1.0, %v1362_v47  ;;  %v342_v45 = vsel %vm340_vm12, 0.0, %v339_v43 }
 0x11b   :  { %343 = vst.msk [vmem:[#allocation2 + $0x48] sm:$0xff] %vm249_vm2, %v341_v44  ;;  %v346_v48 = vmul.f32 0.5, %v342_v45 }
 0x11c   :  { %v399_v49 = vld [vmem:[#allocation2 + $0x40] sm:$0xff] }
 0x11d   :  { %v347_v50 = vadd.f32 %v346_v48, %v345_v46  ;;  %1278 = vmatprep.mubr.msk.f32.mxu1 %vm249_vm2, %v399_v49 }
 0x11f   :  { %vm348_vm13 = vcmp.ge.f32.partialorder %v347_v50, 1.0 }
 0x120   :  { %v349_v51 = vsel %vm348_vm13, 1.0, %v1362_v47  ;;  %v350_v52 = vsel %vm348_vm13, 0.0, %v347_v50 }
 0x121   :  { %351 = vst.msk [vmem:[#allocation2 + $0x50] sm:$0xff] %vm249_vm2, %v349_v51  ;;  %v354_v53 = vmul.f32 0.5, %v350_v52 }
 0x122   :  { %v400_v55 = vld [vmem:[#allocation2 + $0x48] sm:$0xff] }
 0x123   :  { %v355_v56 = vadd.f32 %v354_v53, %v353_v54  ;;  %1279 = vmatmul.mubr.msk.f32.gmra.mrb[16].mxu1 %vm249_vm2, %v400_v55 }
 0x125   :  { %vm356_vm14 = vcmp.ge.f32.partialorder %v355_v56, 1.0 }
 0x126   :  { %v357_v57 = vsel %vm356_vm14, 1.0, %v1362_v47  ;;  %v358_v58 = vsel %vm356_vm14, 0.0, %v355_v56 }
 0x127   :  { %359 = vst.msk [vmem:[#allocation2 + $0x58] sm:$0xff] %vm249_vm2, %v357_v57  ;;  %v362_v60 = vmul.f32 0.5, %v358_v58 }
 0x128   :  { %v401_v61 = vld [vmem:[#allocation2 + $0x50] sm:$0xff] }
 0x129   :  { %v363_v62 = vadd.f32 %v362_v60, %v361_v59  ;;  %1281 = vmatprep.mubr.msk.f32.mxu1 %vm249_vm2, %v401_v61 }
 0x12b   :  { %vm364_vm15 = vcmp.ge.f32.partialorder %v363_v62, 1.0 }
 0x12c   :  { %v365_v63 = vsel %vm364_vm15, 1.0, %v1362_v47  ;;  %v366_v0 = vsel %vm364_vm15, 0.0, %v363_v62 }
 0x12d   :  { %367 = vst.msk [vmem:[#allocation2 + $0x60] sm:$0xff] %vm249_vm2, %v365_v63  ;;  %v370_v1 = vmul.f32 0.5, %v366_v0 }
 0x12e   :  { %v402_v3 = vld [vmem:[#allocation2 + $0x58] sm:$0xff] }
 0x12f   :  { %v371_v4 = vadd.f32 %v370_v1, %v369_v2  ;;  %1282 = vmatmul.mubr.msk.f32.gmra.mrb[18].mxu1 %vm249_vm2, %v402_v3 }
 0x131   :  { %vm372_vm0 = vcmp.ge.f32.partialorder %v371_v4, 1.0 }
 0x132   :  { %v373_v5 = vsel %vm372_vm0, 1.0, %v1362_v47  ;;  %v374_v6 = vsel %vm372_vm0, 0.0, %v371_v4 }
 0x133   :  { %375 = vst.msk [vmem:[#allocation2 + $0x68] sm:$0xff] %vm249_vm2, %v373_v5  ;;  %v378_v8 = vmul.f32 0.5, %v374_v6 }
 0x134   :  { %v403_v9 = vld [vmem:[#allocation2 + $0x60] sm:$0xff] }
 0x135   :  { %v379_v10 = vadd.f32 %v378_v8, %v377_v7  ;;  %1284 = vmatprep.mubr.msk.f32.mxu1 %vm249_vm2, %v403_v9 }
 0x137   :  { %vm380_vm1 = vcmp.ge.f32.partialorder %v379_v10, 1.0 }
 0x138   :  { %v381_v11 = vsel %vm380_vm1, 1.0, %v1362_v47  ;;  %v382_v12 = vsel %vm380_vm1, 0.0, %v379_v10 }
 0x139   :  { %383 = vst.msk [vmem:[#allocation2 + $0x70] sm:$0xff] %vm249_vm2, %v381_v11  ;;  %v386_v13 = vmul.f32 0.5, %v382_v12 }
 0x13a   :  { %v404_v15 = vld [vmem:[#allocation2 + $0x68] sm:$0xff] }
 0x13b   :  { %v387_v16 = vadd.f32 %v386_v13, %v385_v14  ;;  %1285 = vmatmul.mubr.msk.f32.gmra.mrb[20].mxu1 %vm249_vm2, %v404_v15 }
 0x13d   :  { %vm388_vm3 = vcmp.ge.f32.partialorder %v387_v16, 1.0 }
 0x13e   :  { %v389_v17 = vsel %vm388_vm3, 1.0, %v1362_v47 }
 0x13f   :  { %390 = vst.msk [vmem:[#allocation2 + $0x78] sm:$0xff] %vm249_vm2, %v389_v17 }
 0x140   :  { %v405_v18 = vld [vmem:[#allocation2 + $0x70] sm:$0xff] }
 0x141   :  { %1287 = vmatprep.mubr.msk.f32.mxu1 %vm249_vm2, %v405_v18 }
 0x146   :  { %v406_v19 = vld [vmem:[#allocation2 + $0x78] sm:$0xff] }
 0x147   :  { %1288 = vmatmul.mubr.msk.f32.gmra.mrb[22].mxu1 %vm249_vm2, %v406_v19  ;;  %vm609_vm2 = vcmask 261120  }
 0x1c6   :  { %v1268_v27 = vpop.f32.mrb[8].mxu1 }
 0x1c7   :  { %v536_v28 = vadd.f32 %v1268_v27, %v1559_v26  ;;  %v530_v29 = vpop.f32.mrb[9].mxu1 }
 0x1c8   :  { %v531_v30 = vadd.f32 %v1559_v26, %v530_v29 }
 0x1c9   :  { %611 = vst.msk [vmem:[#allocation3 + $0x8] sm:$0xff] %vm609_vm2, %v536_v28 }
 0x1ca   :  { %610 = vst.msk [vmem:[#allocation3] sm:$0xff] %vm609_vm2, %v531_v30 }
 0x1d0   :  { %v633_v39 = vld [vmem:[#allocation3 + $0x8] sm:$0xff] }
 0x1d1   :  { %v626_v31 = vld [vmem:[#allocation3] sm:$0xff] }
 0x1d2   :  { %vm628_vm4 = vcmp.ge.f32.partialorder %v626_v31, 1.0  ;;  %v1271_v32 = vpop.f32.mrb[10].mxu1 }
 0x1d3   :  { %v629_v33 = vsel %vm628_vm4, 1.0, %v1362_v47  ;;  %v630_v34 = vsel %vm628_vm4, 0.0, %v626_v31  ;;  %v546_v35 = vadd.f32 %v1271_v32, %v1559_v26  ;;  %v540_v36 = vpop.f32.mrb[11].mxu1 }
 0x1d4   :  { %631 = vst.msk [vmem:[#allocation3] sm:$0xff] %vm609_vm2, %v629_v33  ;;  %v634_v37 = vmul.f32 0.5, %v630_v34  ;;  %v541_v38 = vadd.f32 %v1559_v26, %v540_v36 }
 0x1d5   :  { %613 = vst.msk [vmem:[#allocation3 + $0x18] sm:$0xff] %vm609_vm2, %v546_v35 }
 0x1d6   :  { %v635_v40 = vadd.f32 %v634_v37, %v633_v39  ;;  %612 = vst.msk [vmem:[#allocation3 + $0x10] sm:$0xff] %vm609_vm2, %v541_v38 }
 0x1d8   :  { %vm636_vm5 = vcmp.ge.f32.partialorder %v635_v40, 1.0 }
 0x1d9   :  { %v637_v41 = vsel %vm636_vm5, 1.0, %v1362_v47  ;;  %v638_v42 = vsel %vm636_vm5, 0.0, %v635_v40  ;;  %vm971_vm5 = vcmask 80896  }
 0x1da   :  { %639 = vst.msk [vmem:[#allocation3 + $0x8] sm:$0xff] %vm609_vm2, %v637_v41  ;;  %v642_v44 = vmul.f32 0.5, %v638_v42 }
 0x1db   :  { %v751_v43 = vld [vmem:[#allocation3] sm:$0xff] }
 0x1dc   :  { %1298 = vmatprep.mubr.msk.f32.mxu0 %vm609_vm2, %v751_v43  ;;  %v649_v56 = vld [vmem:[#allocation3 + $0x18] sm:$0xff] }
 0x1dd   :  { %v641_v45 = vld [vmem:[#allocation3 + $0x10] sm:$0xff] }
 0x1de   :  { %v643_v46 = vadd.f32 %v642_v44, %v641_v45  ;;  %v1274_v48 = vpop.f32.mrb[12].mxu1 }
 0x1df   :  { %v556_v49 = vadd.f32 %v1274_v48, %v1559_v26  ;;  %v550_v50 = vpop.f32.mrb[13].mxu1 }
 0x1e0   :  { %vm644_vm6 = vcmp.ge.f32.partialorder %v643_v46, 1.0  ;;  %v551_v51 = vadd.f32 %v1559_v26, %v550_v50 }
 0x1e1   :  { %v645_v52 = vsel %vm644_vm6, 1.0, %v1362_v47  ;;  %v646_v53 = vsel %vm644_vm6, 0.0, %v643_v46  ;;  %615 = vst.msk [vmem:[#allocation3 + $0x28] sm:$0xff] %vm609_vm2, %v556_v49  ;;  %v752_v54 = vld [vmem:[#allocation3 + $0x8] sm:$0xff] }
 0x1e2   :  { %647 = vst.msk [vmem:[#allocation3 + $0x10] sm:$0xff] %vm609_vm2, %v645_v52  ;;  %v650_v55 = vmul.f32 0.5, %v646_v53  ;;  %614 = vst.msk [vmem:[#allocation3 + $0x20] sm:$0xff] %vm609_vm2, %v551_v51  ;;  %1299 = vmatmul.mubr.msk.f32.vlgmr.msra.gmra.mrb[8].mxu0 %vm609_vm2, %v752_v54 }
 0x1e4   :  { %v651_v57 = vadd.f32 %v650_v55, %v649_v56 }
 0x1e6   :  { %vm652_vm7 = vcmp.ge.f32.partialorder %v651_v57, 1.0 }
 0x1e7   :  { %v653_v58 = vsel %vm652_vm7, 1.0, %v1362_v47  ;;  %v654_v59 = vsel %vm652_vm7, 0.0, %v651_v57 }
 0x1e8   :  { %655 = vst.msk [vmem:[#allocation3 + $0x18] sm:$0xff] %vm609_vm2, %v653_v58  ;;  %v658_v60 = vmul.f32 0.5, %v654_v59  ;;  %v665_v7 = vld [vmem:[#allocation3 + $0x28] sm:$0xff] }
 0x1e9   :  { %v657_v61 = vld [vmem:[#allocation3 + $0x20] sm:$0xff]  ;;  %v753_v62 = vld [vmem:[#allocation3 + $0x10] sm:$0xff] }
 0x1ea   :  { %v659_v63 = vadd.f32 %v658_v60, %v657_v61  ;;  %v1277_v0 = vpop.f32.mrb[14].mxu1  ;;  %1301 = vmatprep.mubr.msk.f32.mxu0 %vm609_vm2, %v753_v62 }
 0x1eb   :  { %v566_v1 = vadd.f32 %v1277_v0, %v1559_v26  ;;  %v560_v2 = vpop.f32.mrb[15].mxu1 }
 0x1ec   :  { %vm660_vm8 = vcmp.ge.f32.partialorder %v659_v63, 1.0  ;;  %v561_v3 = vadd.f32 %v1559_v26, %v560_v2 }
 0x1ed   :  { %v661_v4 = vsel %vm660_vm8, 1.0, %v1362_v47  ;;  %v662_v5 = vsel %vm660_vm8, 0.0, %v659_v63  ;;  %617 = vst.msk [vmem:[#allocation3 + $0x38] sm:$0xff] %vm609_vm2, %v566_v1 }
 0x1ee   :  { %663 = vst.msk [vmem:[#allocation3 + $0x20] sm:$0xff] %vm609_vm2, %v661_v4  ;;  %v666_v6 = vmul.f32 0.5, %v662_v5  ;;  %616 = vst.msk [vmem:[#allocation3 + $0x30] sm:$0xff] %vm609_vm2, %v561_v3 }
 0x1ef   :  { %v754_v8 = vld [vmem:[#allocation3 + $0x18] sm:$0xff] }
 0x1f0   :  { %v667_v9 = vadd.f32 %v666_v6, %v665_v7  ;;  %1302 = vmatmul.mubr.msk.f32.gmra.mrb[10].mxu0 %vm609_vm2, %v754_v8 }
 0x1f2   :  { %vm668_vm9 = vcmp.ge.f32.partialorder %v667_v9, 1.0 }
 0x1f3   :  { %v669_v10 = vsel %vm668_vm9, 1.0, %v1362_v47  ;;  %v670_v11 = vsel %vm668_vm9, 0.0, %v667_v9 }
 0x1f4   :  { %671 = vst.msk [vmem:[#allocation3 + $0x28] sm:$0xff] %vm609_vm2, %v669_v10  ;;  %v674_v12 = vmul.f32 0.5, %v670_v11  ;;  %v681_v23 = vld [vmem:[#allocation3 + $0x38] sm:$0xff] }
 0x1f5   :  { %v673_v13 = vld [vmem:[#allocation3 + $0x30] sm:$0xff]  ;;  %v755_v14 = vld [vmem:[#allocation3 + $0x20] sm:$0xff] }
 0x1f6   :  { %v675_v15 = vadd.f32 %v674_v12, %v673_v13  ;;  %v1280_v16 = vpop.f32.mrb[16].mxu1  ;;  %1304 = vmatprep.mubr.msk.f32.mxu0 %vm609_vm2, %v755_v14 }
 0x1f7   :  { %v576_v17 = vadd.f32 %v1280_v16, %v1559_v26  ;;  %v570_v18 = vpop.f32.mrb[17].mxu1 }
 0x1f8   :  { %vm676_vm10 = vcmp.ge.f32.partialorder %v675_v15, 1.0  ;;  %v571_v19 = vadd.f32 %v1559_v26, %v570_v18 }
 0x1f9   :  { %v677_v20 = vsel %vm676_vm10, 1.0, %v1362_v47  ;;  %v678_v21 = vsel %vm676_vm10, 0.0, %v675_v15  ;;  %619 = vst.msk [vmem:[#allocation3 + $0x48] sm:$0xff] %vm609_vm2, %v576_v17 }
 0x1fa   :  { %679 = vst.msk [vmem:[#allocation3 + $0x30] sm:$0xff] %vm609_vm2, %v677_v20  ;;  %v682_v22 = vmul.f32 0.5, %v678_v21  ;;  %618 = vst.msk [vmem:[#allocation3 + $0x40] sm:$0xff] %vm609_vm2, %v571_v19 }
 0x1fb   :  { %v756_v24 = vld [vmem:[#allocation3 + $0x28] sm:$0xff] }
 0x1fc   :  { %v683_v25 = vadd.f32 %v682_v22, %v681_v23  ;;  %1305 = vmatmul.mubr.msk.f32.gmra.mrb[12].mxu0 %vm609_vm2, %v756_v24 }
 0x1fe   :  { %vm684_vm11 = vcmp.ge.f32.partialorder %v683_v25, 1.0 }
 0x1ff   :  { %v685_v27 = vsel %vm684_vm11, 1.0, %v1362_v47  ;;  %v686_v28 = vsel %vm684_vm11, 0.0, %v683_v25 }
 0x200   :  { %687 = vst.msk [vmem:[#allocation3 + $0x38] sm:$0xff] %vm609_vm2, %v685_v27  ;;  %v690_v29 = vmul.f32 0.5, %v686_v28  ;;  %v697_v40 = vld [vmem:[#allocation3 + $0x48] sm:$0xff]  ;;  %v1644_v27 = vld [vmem:[%s1769_s6] ss:$0 sm:$0xff]  ;;  %s1363_s6 = smov [#allocation5]  }
 0x201   :  { %v689_v30 = vld [vmem:[#allocation3 + $0x40] sm:$0xff]  ;;  %v757_v31 = vld [vmem:[#allocation3 + $0x30] sm:$0xff]  ;;  %s1121_s23 = sshll.u32 %s1363_s6, 4  ;;  %s1122_s23 = int_to_ptr.vmem [resolvable:$true] %s1121_s23 }
 0x202   :  { %v691_v32 = vadd.f32 %v690_v29, %v689_v30  ;;  %v1283_v33 = vpop.f32.mrb[18].mxu1  ;;  %1307 = vmatprep.mubr.msk.f32.mxu0 %vm609_vm2, %v757_v31  ;;  %s1338_s24 = scalar_lea.vmem %s1122_s23, 128  ;;  %p1343_p1 = scmp.lt.s32.totalorder %s1122_s23, %s1122_s23 }
 0x203   :  { %v586_v34 = vadd.f32 %v1283_v33, %v1559_v26  ;;  %v580_v35 = vpop.f32.mrb[19].mxu1  ;;  %p1339_p0 = scmp.ne.s32.totalorder %s1122_s23, %s1338_s24  ;;  %p1344_p2 = scmp.lt.s32.totalorder %s1338_s24, %s1338_s24 }
 0x204   :  { %vm692_vm12 = vcmp.ge.f32.partialorder %v691_v32, 1.0  ;;  %v581_v36 = vadd.f32 %v1559_v26, %v580_v35 }
 0x205   :  { %v693_v37 = vsel %vm692_vm12, 1.0, %v1362_v47  ;;  %v694_v38 = vsel %vm692_vm12, 0.0, %v691_v32  ;;  %621 = vst.msk [vmem:[#allocation3 + $0x58] sm:$0xff] %vm609_vm2, %v586_v34  ;;  %p1345_p3 = por %p1344_p2, %p1343_p1 }
 0x206   :  { %695 = vst.msk [vmem:[#allocation3 + $0x40] sm:$0xff] %vm609_vm2, %v693_v37  ;;  %v698_v39 = vmul.f32 0.5, %v694_v38  ;;  %620 = vst.msk [vmem:[#allocation3 + $0x50] sm:$0xff] %vm609_vm2, %v581_v36 }
 0x207   :  { %v758_v41 = vld [vmem:[#allocation3 + $0x38] sm:$0xff]  ;;  %p1346_p4 = pnand %p1345_p3, %p1339_p0 }
 0x208   :  { %v699_v42 = vadd.f32 %v698_v39, %v697_v40  ;;  %1308 = vmatmul.mubr.msk.f32.gmra.mrb[14].mxu0 %vm609_vm2, %v758_v41 }
 0x20a   :  { %vm700_vm13 = vcmp.ge.f32.partialorder %v699_v42, 1.0 }
 0x20b   :  { %v701_v43 = vsel %vm700_vm13, 1.0, %v1362_v47  ;;  %v702_v44 = vsel %vm700_vm13, 0.0, %v699_v42 }
 0x20c   :  { %703 = vst.msk [vmem:[#allocation3 + $0x48] sm:$0xff] %vm609_vm2, %v701_v43  ;;  %v706_v45 = vmul.f32 0.5, %v702_v44  ;;  %v713_v57 = vld [vmem:[#allocation3 + $0x58] sm:$0xff] }
 0x20d   :  { %v705_v46 = vld [vmem:[#allocation3 + $0x50] sm:$0xff]  ;;  %v759_v48 = vld [vmem:[#allocation3 + $0x40] sm:$0xff] }
 0x20e   :  { %v707_v49 = vadd.f32 %v706_v45, %v705_v46  ;;  %v1286_v50 = vpop.f32.mrb[20].mxu1  ;;  %1310 = vmatprep.mubr.msk.f32.mxu0 %vm609_vm2, %v759_v48 }
 0x20f   :  { %v596_v51 = vadd.f32 %v1286_v50, %v1559_v26  ;;  %v590_v52 = vpop.f32.mrb[21].mxu1 }
 0x210   :  { %vm708_vm14 = vcmp.ge.f32.partialorder %v707_v49, 1.0  ;;  %v591_v53 = vadd.f32 %v1559_v26, %v590_v52 }
 0x211   :  { %v709_v54 = vsel %vm708_vm14, 1.0, %v1362_v47  ;;  %v710_v55 = vsel %vm708_vm14, 0.0, %v707_v49  ;;  %623 = vst.msk [vmem:[#allocation3 + $0x68] sm:$0xff] %vm609_vm2, %v596_v51 }
 0x212   :  { %711 = vst.msk [vmem:[#allocation3 + $0x50] sm:$0xff] %vm609_vm2, %v709_v54  ;;  %v714_v56 = vmul.f32 0.5, %v710_v55  ;;  %622 = vst.msk [vmem:[#allocation3 + $0x60] sm:$0xff] %vm609_vm2, %v591_v53 }
 0x213   :  { %v760_v58 = vld [vmem:[#allocation3 + $0x48] sm:$0xff] }
 0x214   :  { %v715_v59 = vadd.f32 %v714_v56, %v713_v57  ;;  %1311 = vmatmul.mubr.msk.f32.gmra.mrb[16].mxu0 %vm609_vm2, %v760_v58 }
 0x216   :  { %vm716_vm15 = vcmp.ge.f32.partialorder %v715_v59, 1.0 }
 0x217   :  { %v717_v60 = vsel %vm716_vm15, 1.0, %v1362_v47  ;;  %v718_v61 = vsel %vm716_vm15, 0.0, %v715_v59 }
 0x218   :  { %719 = vst.msk [vmem:[#allocation3 + $0x58] sm:$0xff] %vm609_vm2, %v717_v60  ;;  %v722_v62 = vmul.f32 0.5, %v718_v61  ;;  %v729_v9 = vld [vmem:[#allocation3 + $0x68] sm:$0xff] }
 0x219   :  { %v721_v63 = vld [vmem:[#allocation3 + $0x60] sm:$0xff]  ;;  %v761_v0 = vld [vmem:[#allocation3 + $0x50] sm:$0xff] }
 0x21a   :  { %v723_v1 = vadd.f32 %v722_v62, %v721_v63  ;;  %v1289_v2 = vpop.f32.mrb[22].mxu1  ;;  %1313 = vmatprep.mubr.msk.f32.mxu0 %vm609_vm2, %v761_v0 }
 0x21b   :  { %v606_v3 = vadd.f32 %v1289_v2, %v1559_v26  ;;  %v600_v4 = vpop.f32.mrb[23].mxu1 }
 0x21c   :  { %vm724_vm0 = vcmp.ge.f32.partialorder %v723_v1, 1.0  ;;  %v601_v5 = vadd.f32 %v1559_v26, %v600_v4 }
 0x21d   :  { %v725_v6 = vsel %vm724_vm0, 1.0, %v1362_v47  ;;  %v726_v7 = vsel %vm724_vm0, 0.0, %v723_v1  ;;  %625 = vst.msk [vmem:[#allocation3 + $0x78] sm:$0xff] %vm609_vm2, %v606_v3 }
 0x21e   :  { %727 = vst.msk [vmem:[#allocation3 + $0x60] sm:$0xff] %vm609_vm2, %v725_v6  ;;  %v730_v8 = vmul.f32 0.5, %v726_v7  ;;  %624 = vst.msk [vmem:[#allocation3 + $0x70] sm:$0xff] %vm609_vm2, %v601_v5 }
 0x21f   :  { %v762_v10 = vld [vmem:[#allocation3 + $0x58] sm:$0xff] }
 0x220   :  { %v731_v11 = vadd.f32 %v730_v8, %v729_v9  ;;  %1314 = vmatmul.mubr.msk.f32.gmra.mrb[18].mxu0 %vm609_vm2, %v762_v10 }
 0x222   :  { %vm732_vm1 = vcmp.ge.f32.partialorder %v731_v11, 1.0 }
 0x223   :  { %v733_v12 = vsel %vm732_vm1, 1.0, %v1362_v47  ;;  %v734_v13 = vsel %vm732_vm1, 0.0, %v731_v11 }
 0x224   :  { %735 = vst.msk [vmem:[#allocation3 + $0x68] sm:$0xff] %vm609_vm2, %v733_v12  ;;  %v738_v26 = vmul.f32 0.5, %v734_v13  ;;  %v745_v20 = vld [vmem:[#allocation3 + $0x78] sm:$0xff] }
 0x225   :  { %v737_v14 = vld [vmem:[#allocation3 + $0x70] sm:$0xff]  ;;  %v763_v15 = vld [vmem:[#allocation3 + $0x60] sm:$0xff] }
 0x226   :  { %v739_v16 = vadd.f32 %v738_v26, %v737_v14  ;;  %1316 = vmatprep.mubr.msk.f32.mxu0 %vm609_vm2, %v763_v15 }
 0x228   :  { %vm740_vm3 = vcmp.ge.f32.partialorder %v739_v16, 1.0 }
 0x229   :  { %v741_v17 = vsel %vm740_vm3, 1.0, %v1362_v47  ;;  %v742_v18 = vsel %vm740_vm3, 0.0, %v739_v16 }
 0x22a   :  { %743 = vst.msk [vmem:[#allocation3 + $0x70] sm:$0xff] %vm609_vm2, %v741_v17  ;;  %v746_v19 = vmul.f32 0.5, %v742_v18 }
 0x22b   :  { %v764_v21 = vld [vmem:[#allocation3 + $0x68] sm:$0xff] }
 0x22c   :  { %v747_v22 = vadd.f32 %v746_v19, %v745_v20  ;;  %1317 = vmatmul.mubr.msk.f32.gmra.mrb[20].mxu0 %vm609_vm2, %v764_v21 }
 0x22e   :  { %vm748_vm4 = vcmp.ge.f32.partialorder %v747_v22, 1.0 }
 0x22f   :  { %v749_v23 = vsel %vm748_vm4, 1.0, %v1362_v47 }
 0x230   :  { %750 = vst.msk [vmem:[#allocation3 + $0x78] sm:$0xff] %vm609_vm2, %v749_v23 }
 0x231   :  { %v765_v24 = vld [vmem:[#allocation3 + $0x70] sm:$0xff] }
 0x232   :  { %1319 = vmatprep.mubr.msk.f32.mxu0 %vm609_vm2, %v765_v24 }
 0x237   :  { %v766_v25 = vld [vmem:[#allocation3 + $0x78] sm:$0xff] }
 0x238   :  { %1320 = vmatmul.mubr.msk.f32.gmra.mrb[22].mxu0 %vm609_vm2, %v766_v25 }
 0x2b5   :  { %v1300_v28 = vpop.f32.mrb[8].mxu0 }
 0x2b6   :  { %v898_v29 = vadd.f32 %v1300_v28, %v1644_v27  ;;  %v892_v30 = vpop.f32.mrb[9].mxu0 }
 0x2b7   :  { %v893_v31 = vadd.f32 %v1644_v27, %v892_v30 }
 0x2b8   :  { %973 = vst.msk [vmem:[#allocation4 + $0x8] sm:$0xff] %vm971_vm5, %v898_v29 }
 0x2b9   :  { %972 = vst.msk [vmem:[#allocation4] sm:$0xff] %vm971_vm5, %v893_v31 }
 0x2bf   :  { %v995_v36 = vld [vmem:[#allocation4 + $0x8] sm:$0xff] }
 0x2c0   :  { %v1650_v32 = vld [vmem:[#allocation4] sm:$0xff] }
 0x2c1   :  { %vm990_vm2 = vcmp.ge.f32.partialorder %v1650_v32, 1.0 }
 0x2c2   :  { %v992_v33 = vsel %vm990_vm2, 0.0, %v1650_v32 }
 0x2c3   :  { %v1303_v34 = vpop.f32.mrb[10].mxu0  ;;  %v996_v35 = vmul.f32 0.5, %v992_v33 }
 0x2c4   :  { %v908_v37 = vadd.f32 %v1303_v34, %v1644_v27  ;;  %v902_v38 = vpop.f32.mrb[11].mxu0 }
 0x2c5   :  { %v903_v39 = vadd.f32 %v1644_v27, %v902_v38  ;;  %v1658_v40 = vadd.f32 %v996_v35, %v995_v36 }
 0x2c6   :  { %975 = vst.msk [vmem:[#allocation4 + $0x18] sm:$0xff] %vm971_vm5, %v908_v37 }
 0x2c7   :  { %974 = vst.msk [vmem:[#allocation4 + $0x10] sm:$0xff] %vm971_vm5, %v903_v39  ;;  %vm998_vm6 = vcmp.ge.f32.partialorder %v1658_v40, 1.0  ;;  %v991_v39 = vsel %vm990_vm2, 1.0, %v1362_v47 }
 0x2c8   :  { %v1000_v41 = vsel %vm998_vm6, 0.0, %v1658_v40  ;;  %v999_v36 = vsel %vm998_vm6, 1.0, %v1362_v47 }
 0x2c9   :  { %v1004_v42 = vmul.f32 0.5, %v1000_v41 }
 0x2cd   :  { %v1011_v52 = vld [vmem:[#allocation4 + $0x18] sm:$0xff] }
 0x2ce   :  { %v1003_v43 = vld [vmem:[#allocation4 + $0x10] sm:$0xff] }
 0x2cf   :  { %v1306_v44 = vpop.f32.mrb[12].mxu0  ;;  %v1666_v45 = vadd.f32 %v1004_v42, %v1003_v43  ;;  %v1001_v43 = vadd.f32 %v999_v36, %v991_v39 }
 0x2d0   :  { %v918_v46 = vadd.f32 %v1306_v44, %v1644_v27  ;;  %v912_v48 = vpop.f32.mrb[13].mxu0 }
 0x2d1   :  { %v913_v49 = vadd.f32 %v1644_v27, %v912_v48  ;;  %vm1006_vm7 = vcmp.ge.f32.partialorder %v1666_v45, 1.0 }
 0x2d2   :  { %977 = vst.msk [vmem:[#allocation4 + $0x28] sm:$0xff] %vm971_vm5, %v918_v46  ;;  %v1008_v50 = vsel %vm1006_vm7, 0.0, %v1666_v45  ;;  %v1007_v41 = vsel %vm1006_vm7, 1.0, %v1362_v47 }
 0x2d3   :  { %976 = vst.msk [vmem:[#allocation4 + $0x20] sm:$0xff] %vm971_vm5, %v913_v49  ;;  %v1012_v51 = vmul.f32 0.5, %v1008_v50  ;;  %v1009_v46 = vadd.f32 %v1007_v41, %v1001_v43 }
 0x2d5   :  { %v1676_v53 = vadd.f32 %v1012_v51, %v1011_v52 }
 0x2d7   :  { %vm1014_vm8 = vcmp.ge.f32.partialorder %v1676_v53, 1.0 }
 0x2d8   :  { %v1016_v54 = vsel %vm1014_vm8, 0.0, %v1676_v53  ;;  %v1015_v40 = vsel %vm1014_vm8, 1.0, %v1362_v47 }
 0x2d9   :  { %v1020_v55 = vmul.f32 0.5, %v1016_v54  ;;  %v1027_v0 = vld [vmem:[#allocation4 + $0x28] sm:$0xff]  ;;  %v1017_v49 = vadd.f32 %v1015_v40, %v1009_v46 }
 0x2da   :  { %v1019_v56 = vld [vmem:[#allocation4 + $0x20] sm:$0xff] }
 0x2db   :  { %v1309_v57 = vpop.f32.mrb[14].mxu0  ;;  %v1682_v58 = vadd.f32 %v1020_v55, %v1019_v56 }
 0x2dc   :  { %v928_v59 = vadd.f32 %v1309_v57, %v1644_v27  ;;  %v922_v60 = vpop.f32.mrb[15].mxu0 }
 0x2dd   :  { %v923_v61 = vadd.f32 %v1644_v27, %v922_v60  ;;  %vm1022_vm9 = vcmp.ge.f32.partialorder %v1682_v58, 1.0 }
 0x2de   :  { %979 = vst.msk [vmem:[#allocation4 + $0x38] sm:$0xff] %vm971_vm5, %v928_v59  ;;  %v1024_v62 = vsel %vm1022_vm9, 0.0, %v1682_v58  ;;  %v1023_v48 = vsel %vm1022_vm9, 1.0, %v1362_v47 }
 0x2df   :  { %978 = vst.msk [vmem:[#allocation4 + $0x30] sm:$0xff] %vm971_vm5, %v923_v61  ;;  %v1028_v63 = vmul.f32 0.5, %v1024_v62  ;;  %v1025_v54 = vadd.f32 %v1023_v48, %v1017_v49 }
 0x2e1   :  { %v1029_v1 = vadd.f32 %v1028_v63, %v1027_v0 }
 0x2e3   :  { %vm1030_vm10 = vcmp.ge.f32.partialorder %v1029_v1, 1.0 }
 0x2e4   :  { %v1032_v2 = vsel %vm1030_vm10, 0.0, %v1029_v1  ;;  %v1031_v45 = vsel %vm1030_vm10, 1.0, %v1362_v47 }
 0x2e5   :  { %v1036_v3 = vmul.f32 0.5, %v1032_v2  ;;  %v1043_v12 = vld [vmem:[#allocation4 + $0x38] sm:$0xff]  ;;  %v1033_v59 = vadd.f32 %v1031_v45, %v1025_v54 }
 0x2e6   :  { %v1035_v4 = vld [vmem:[#allocation4 + $0x30] sm:$0xff] }
 0x2e7   :  { %v1312_v5 = vpop.f32.mrb[16].mxu0  ;;  %v1037_v6 = vadd.f32 %v1036_v3, %v1035_v4 }
 0x2e8   :  { %v938_v7 = vadd.f32 %v1312_v5, %v1644_v27  ;;  %v932_v8 = vpop.f32.mrb[17].mxu0 }
 0x2e9   :  { %v933_v9 = vadd.f32 %v1644_v27, %v932_v8  ;;  %vm1038_vm11 = vcmp.ge.f32.partialorder %v1037_v6, 1.0 }
 0x2ea   :  { %981 = vst.msk [vmem:[#allocation4 + $0x48] sm:$0xff] %vm971_vm5, %v938_v7  ;;  %v1040_v10 = vsel %vm1038_vm11, 0.0, %v1037_v6  ;;  %v1039_v57 = vsel %vm1038_vm11, 1.0, %v1362_v47 }
 0x2eb   :  { %980 = vst.msk [vmem:[#allocation4 + $0x40] sm:$0xff] %vm971_vm5, %v933_v9  ;;  %v1044_v11 = vmul.f32 0.5, %v1040_v10  ;;  %v1041_v62 = vadd.f32 %v1039_v57, %v1033_v59 }
 0x2ed   :  { %v1045_v13 = vadd.f32 %v1044_v11, %v1043_v12 }
 0x2ef   :  { %vm1046_vm12 = vcmp.ge.f32.partialorder %v1045_v13, 1.0 }
 0x2f0   :  { %v1048_v26 = vsel %vm1046_vm12, 0.0, %v1045_v13  ;;  %v1047_v60 = vsel %vm1046_vm12, 1.0, %v1362_v47 }
 0x2f1   :  { %v1052_v14 = vmul.f32 0.5, %v1048_v26  ;;  %v1059_v23 = vld [vmem:[#allocation4 + $0x48] sm:$0xff]  ;;  %v1049_v2 = vadd.f32 %v1047_v60, %v1041_v62 }
 0x2f2   :  { %v1051_v15 = vld [vmem:[#allocation4 + $0x40] sm:$0xff] }
 0x2f3   :  { %v1315_v16 = vpop.f32.mrb[18].mxu0  ;;  %v1053_v17 = vadd.f32 %v1052_v14, %v1051_v15 }
 0x2f4   :  { %v948_v18 = vadd.f32 %v1315_v16, %v1644_v27  ;;  %v942_v19 = vpop.f32.mrb[19].mxu0 }
 0x2f5   :  { %v943_v20 = vadd.f32 %v1644_v27, %v942_v19  ;;  %vm1054_vm13 = vcmp.ge.f32.partialorder %v1053_v17, 1.0 }
 0x2f6   :  { %983 = vst.msk [vmem:[#allocation4 + $0x58] sm:$0xff] %vm971_vm5, %v948_v18  ;;  %v1056_v21 = vsel %vm1054_vm13, 0.0, %v1053_v17  ;;  %v1055_v0 = vsel %vm1054_vm13, 1.0, %v1362_v47 }
 0x2f7   :  { %982 = vst.msk [vmem:[#allocation4 + $0x50] sm:$0xff] %vm971_vm5, %v943_v20  ;;  %v1060_v22 = vmul.f32 0.5, %v1056_v21  ;;  %v1057_v4 = vadd.f32 %v1055_v0, %v1049_v2 }
 0x2f9   :  { %v1061_v24 = vadd.f32 %v1060_v22, %v1059_v23 }
 0x2fb   :  { %vm1062_vm14 = vcmp.ge.f32.partialorder %v1061_v24, 1.0 }
 0x2fc   :  { %v1064_v25 = vsel %vm1062_vm14, 0.0, %v1061_v24 }
 0x2fd   :  { %v1068_v28 = vmul.f32 0.5, %v1064_v25  ;;  %v1075_v42 = vld [vmem:[#allocation4 + $0x58] sm:$0xff] }
 0x2fe   :  { %v1067_v29 = vld [vmem:[#allocation4 + $0x50] sm:$0xff] }
 0x2ff   :  { %v1318_v30 = vpop.f32.mrb[20].mxu0  ;;  %v1069_v31 = vadd.f32 %v1068_v28, %v1067_v29 }
 0x300   :  { %v958_v33 = vadd.f32 %v1318_v30, %v1644_v27  ;;  %v952_v34 = vpop.f32.mrb[21].mxu0 }
 0x301   :  { %v953_v35 = vadd.f32 %v1644_v27, %v952_v34  ;;  %vm1070_vm15 = vcmp.ge.f32.partialorder %v1069_v31, 1.0 }
 0x302   :  { %985 = vst.msk [vmem:[#allocation4 + $0x68] sm:$0xff] %vm971_vm5, %v958_v33  ;;  %v1072_v37 = vsel %vm1070_vm15, 0.0, %v1069_v31  ;;  %v1071_v5 = vsel %vm1070_vm15, 1.0, %v1362_v47 }
 0x303   :  { %984 = vst.msk [vmem:[#allocation4 + $0x60] sm:$0xff] %vm971_vm5, %v953_v35  ;;  %v1076_v38 = vmul.f32 0.5, %v1072_v37 }
 0x305   :  { %v1077_v44 = vadd.f32 %v1076_v38, %v1075_v42 }
 0x307   :  { %vm1078_vm0 = vcmp.ge.f32.partialorder %v1077_v44, 1.0 }
 0x308   :  { %v1080_v32 = vsel %vm1078_vm0, 0.0, %v1077_v44  ;;  %v1079_v9 = vsel %vm1078_vm0, 1.0, %v1362_v47 }
 0x309   :  { %v1084_v50 = vmul.f32 0.5, %v1080_v32  ;;  %v1091_v1 = vld [vmem:[#allocation4 + $0x68] sm:$0xff] }
 0x30a   :  { %v1083_v51 = vld [vmem:[#allocation4 + $0x60] sm:$0xff] }
 0x30b   :  { %v1321_v52 = vpop.f32.mrb[22].mxu0  ;;  %v1085_v55 = vadd.f32 %v1084_v50, %v1083_v51 }
 0x30c   :  { %v968_v53 = vadd.f32 %v1321_v52, %v1644_v27  ;;  %v962_v56 = vpop.f32.mrb[23].mxu0 }
 0x30d   :  { %v963_v58 = vadd.f32 %v1644_v27, %v962_v56  ;;  %vm1086_vm1 = vcmp.ge.f32.partialorder %v1085_v55, 1.0  ;;  %v1063_v27 = vsel %vm1062_vm14, 1.0, %v1362_v47 }
 0x30e   :  { %987 = vst.msk [vmem:[#allocation4 + $0x78] sm:$0xff] %vm971_vm5, %v968_v53  ;;  %v1088_v61 = vsel %vm1086_vm1, 0.0, %v1085_v55  ;;  %v1065_v7 = vadd.f32 %v1063_v27, %v1057_v4  ;;  %v1087_v13 = vsel %vm1086_vm1, 1.0, %v1362_v47 }
 0x30f   :  { %986 = vst.msk [vmem:[#allocation4 + $0x70] sm:$0xff] %vm971_vm5, %v963_v58  ;;  %v1092_v63 = vmul.f32 0.5, %v1088_v61 }
 0x310   :  { %v1073_v11 = vadd.f32 %v1071_v5, %v1065_v7 }
 0x311   :  { %v1093_v3 = vadd.f32 %v1092_v63, %v1091_v1 }
 0x312   :  { %v1081_v26 = vadd.f32 %v1079_v9, %v1073_v11 }
 0x313   :  { %vm1094_vm3 = vcmp.ge.f32.partialorder %v1093_v3, 1.0 }
 0x314   :  { %v1096_v6 = vsel %vm1094_vm3, 0.0, %v1093_v3  ;;  %v1095_v14 = vsel %vm1094_vm3, 1.0, %v1362_v47  ;;  %v1089_v16 = vadd.f32 %v1087_v13, %v1081_v26 }
 0x315   :  { %v1100_v8 = vmul.f32 0.5, %v1096_v6  ;;  %v1107_v19 = vld [vmem:[#allocation4 + $0x78] sm:$0xff] }
 0x316   :  { %v1099_v10 = vld [vmem:[#allocation4 + $0x70] sm:$0xff]  ;;  %v1097_v20 = vadd.f32 %v1095_v14, %v1089_v16 }
 0x317   :  { %v1101_v12 = vadd.f32 %v1100_v8, %v1099_v10 }
 0x319   :  { %vm1102_vm4 = vcmp.ge.f32.partialorder %v1101_v12, 1.0 }
 0x31a   :  { %v1104_v15 = vsel %vm1102_vm4, 0.0, %v1101_v12  ;;  %v1103_v18 = vsel %vm1102_vm4, 1.0, %v1362_v47 }
 0x31b   :  { %v1108_v17 = vmul.f32 0.5, %v1104_v15  ;;  %v1105_v22 = vadd.f32 %v1103_v18, %v1097_v20 }
 0x31d   :  { %v1109_v21 = vadd.f32 %v1108_v17, %v1107_v19 }
 0x31f   :  { %vm1110_vm2 = vcmp.ge.f32.partialorder %v1109_v21, 1.0 }
 0x320   :  { %v1111_v23 = vsel %vm1110_vm2, 1.0, %v1362_v47 }
 0x321   :  { %v1112_v24 = vadd.f32 %v1111_v23, %v1105_v22 }
 0x323   :  { %v1113_v25 = vmul.f32 0.0625, %v1112_v24 }
 0x325   :  { %1114 = vst.msk [vmem:[#allocation5] sm:$0xff] %vm971_vm5, %v1113_v25 }
 0x326   :  { %1349 = shalt.err (!%p1346_p4)
}
 0x327   :  { %s1350_s27 = scalar_lea.hbm %s1770_s7, 128 }
 0x328   :  { %p1351_p5 = scmp.ne.s32.totalorder %s1770_s7, %s1350_s27  ;;  %p1354_p6 = scmp.lt.u32.totalorder %s1350_s27, %s1770_s7 }
 0x32a   :  { %p1356_p7 = pnand %p1354_p6, %p1351_p5 }
 0x32c   :  { %1359 = shalt.err (!%p1356_p7)
}
 0x32d   :  { %1124 = dma.vmem_to_hbm [thread:$0]  %s1122_s23, 128, %s1770_s7, [#allocation6]  }
 0x32e   :  { %1360 = dma.done.wait [#allocation6], 128  }
 0x32f   :  { %1361 = vsyncadd [#allocation6], 4294967168 }
 0x330   :  { %1128 = vsyncpa [#allocation6], 1 }

</bundles_post_ra>
